<compile_context>
chip_gen: v5e
topology: v5e:2x2
jax: 0.10.0
libtpu: 0.0.40
codegen_flags: <defaults>
</compile_context>

<pallas_src>
import functools

import jax
import jax.numpy as jnp
import numpy as np
from jax import lax
from jax.experimental import pallas as pl
from jax.experimental.pallas import tpu as pltpu


def _bilstm_kernel(gx_ref, whh_ref, h0_ref, c0_ref,
                   out_ref, hN_ref, cN_ref, h_sc, c_sc,
                   *, block_t, unroll):
    """Grid = (direction, time_tile).  Direction is parallel, time sequential.

    gx_ref : (block_t, B, 4H)  precomputed x-projection (+bias) for this tile
    whh_ref: (H, 4H)           this direction's recurrent weights (W_hh^T)
    h0/c0  : (B, H)            this direction's learned initial state
    out_ref: (block_t, B, H)   per-step hidden states for this tile
    hN/cN  : (B, H)            final states (written at the last tile)
    """
    d = pl.program_id(0)        # 0 = forward, 1 = backward
    tau = pl.program_id(1)      # time-tile index (tiles already reversed for bwd)

    @pl.when(tau == 0)
    def _():
        h_sc[...] = h0_ref[...]
        c_sc[...] = c0_ref[...]

    H = h_sc.shape[-1]
    whh = whh_ref[...]          # hoisted load; resident for the whole tile

    def step(s, carry):
        # within-tile step: forward walks 0..block_t-1, backward walks reversed
        idx = d * (block_t - 1 - s) + (1 - d) * s
        gates = gx_ref[idx] + jnp.dot(h_sc[...], whh,
                                      preferred_element_type=jnp.float32)
        # PyTorch gate order: i, f, g, o   (all math kept in f32)
        i_g = jax.nn.sigmoid(gates[:, 0 * H:1 * H])
        f_g = jax.nn.sigmoid(gates[:, 1 * H:2 * H])
        g_g = jnp.tanh(gates[:, 2 * H:3 * H])
        o_g = jax.nn.sigmoid(gates[:, 3 * H:4 * H])
        c_new = f_g * c_sc[...] + i_g * g_g
        h_new = o_g * jnp.tanh(c_new)
        h_sc[...] = h_new
        c_sc[...] = c_new
        out_ref[idx] = h_new
        return carry

    lax.fori_loop(0, block_t, step, 0, unroll=unroll)

    @pl.when(tau == pl.num_programs(1) - 1)
    def _():
        hN_ref[...] = h_sc[...]
        cN_ref[...] = c_sc[...]


def _bilstm_pallas(gx, w_hh_T, h0, c0, *, block_t=None):
    """gx: [2, T, B, 4H] precomputed gate slab; returns (out [2,T,B,H], h_n, c_n)."""
    n_dir, T, B, G = gx.shape
    H = h0.shape[-1]
    assert n_dir == 2 and G == 4 * H

    if block_t is None:
        block_t = min(T, 128)
        while T % block_t:          # pick a divisor of T (no padding needed)
            block_t -= 1
    n_t = T // block_t
    unroll = block_t <= 32          # short fixed trip counts: unroll for LLO

    kernel = functools.partial(_bilstm_kernel, block_t=block_t, unroll=unroll)

    def time_map(d, t):
        # forward visits time tiles 0..n_t-1; backward visits them reversed
        return d * (n_t - 1 - t) + (1 - d) * t

    gx_spec = pl.BlockSpec((None, block_t, B, 4 * H),
                           lambda d, t: (d, time_map(d, t), 0, 0))
    out_spec = pl.BlockSpec((None, block_t, B, H),
                            lambda d, t: (d, time_map(d, t), 0, 0))

    def dir_spec(m, n):
        return pl.BlockSpec((None, m, n), lambda d, t: (d, 0, 0))

    out, h_n, c_n = pl.pallas_call(
        kernel,
        out_shape=(
            jax.ShapeDtypeStruct((n_dir, T, B, H), jnp.float32),
            jax.ShapeDtypeStruct((n_dir, B, H), jnp.float32),
            jax.ShapeDtypeStruct((n_dir, B, H), jnp.float32),
        ),
        grid=(n_dir, n_t),
        in_specs=[
            gx_spec,                 # precomputed x-projection (+bias)
            dir_spec(H, 4 * H),      # W_hh^T, per direction
            dir_spec(B, H),          # h0, per direction
            dir_spec(B, H),          # c0, per direction
        ],
        out_specs=(
            out_spec,                # per-step hidden states
            dir_spec(B, H),          # final h
            dir_spec(B, H),          # final c
        ),
        scratch_shapes=[
            pltpu.VMEM((B, H), jnp.float32),   # h carry
            pltpu.VMEM((B, H), jnp.float32),   # c carry
        ],
        compiler_params=pltpu.CompilerParams(
            dimension_semantics=("parallel", "arbitrary")),
    )(gx, w_hh_T, h0, c0)
    return out, h_n, c_n


class PallasBiLSTM:
    """Mirrors the PyTorch LSTM module (n_layers=1, birnn=True), eval mode."""

    def __init__(self, d_input, d_h, key):
        self.d_input = d_input
        self.d_h = d_h
        ks = jax.random.split(key, 10)
        INI = 0.01
        k = 1.0 / np.sqrt(d_h)
        u = lambda kk, shape, lim: jax.random.uniform(
            kk, shape, jnp.float32, -lim, lim)

        # learned initial states: [n_layers * n_dir, d_h] = [2, d_h]
        self.init_h = u(ks[0], (2, d_h), INI)
        self.init_c = u(ks[1], (2, d_h), INI)

        # nn.LSTM parameters (gate order i,f,g,o), stacked over directions
        w_ih_T, w_hh_T, bias = [], [], []
        for d in range(2):
            w_ih = u(ks[2 + 4 * d], (4 * d_h, d_input), k)
            w_hh = u(ks[3 + 4 * d], (4 * d_h, d_h), k)
            b_ih = u(ks[4 + 4 * d], (4 * d_h,), k)
            b_hh = u(ks[5 + 4 * d], (4 * d_h,), k)
            w_ih_T.append(w_ih.T)            # [D_in, 4H]
            w_hh_T.append(w_hh.T)            # [H, 4H]
            bias.append(b_ih + b_hh)         # [4H]
        self.w_ih_T = jnp.stack(w_ih_T, 0)   # [2, D_in, 4H]
        self.w_hh_T = jnp.stack(w_hh_T, 0)   # [2, H, 4H]
        self.bias = jnp.stack(bias, 0)       # [2, 4H]

    def __call__(self, seqs):
        """seqs: [B, T, D_in] -> (lstm_out [B, T, 2H], (h_n [2,B,H], c_n [2,B,H]))."""
        B, T, D = seqs.shape
        H = self.d_h
        x_tbd = jnp.transpose(seqs, (1, 0, 2)).astype(jnp.float32)   # [T, B, D]

        # Hoisted input projection for BOTH directions: one big MXU matmul
        # instead of T tiny per-step matmuls inside the recurrence.
        gx = jnp.einsum('tbd,zdg->ztbg', x_tbd, self.w_ih_T,
                        preferred_element_type=jnp.float32)
        gx = gx + self.bias[:, None, None, :]                        # [2,T,B,4H]

        h0 = jnp.broadcast_to(self.init_h[:, None, :], (2, B, H))
        c0 = jnp.broadcast_to(self.init_c[:, None, :], (2, B, H))

        out, h_n, c_n = _bilstm_pallas(gx, self.w_hh_T, h0, c0)

        # [2, T, B, H] -> [B, T, 2H]  (fwd features first, then bwd)
        lstm_out = jnp.transpose(out, (2, 1, 0, 3)).reshape(B, T, 2 * H)
        return lstm_out, (h_n, c_n)


def _reference_direction(x_tbd, w_ih_T, w_hh_T, bias, h0, c0, reverse):
    """Pure-JAX scan reference for correctness checking."""
    H = h0.shape[-1]

    def step(carry, x_t):
        h, c = carry
        gates = x_t @ w_ih_T + h @ w_hh_T + bias
        i = jax.nn.sigmoid(gates[:, 0 * H:1 * H])
        f = jax.nn.sigmoid(gates[:, 1 * H:2 * H])
        g = jnp.tanh(gates[:, 2 * H:3 * H])
        o = jax.nn.sigmoid(gates[:, 3 * H:4 * H])
        c = f * c + i * g
        h = o * jnp.tanh(c)
        return (h, c), h

    (hN, cN), out = lax.scan(step, (h0, c0), x_tbd, reverse=reverse)
    return out, hN, cN


if __name__ == "__main__":
    key = jax.random.PRNGKey(0)
    k_param, k_x = jax.random.split(key)

    B, T, D_IN, D_H = 2, 8, 16, 32
    model = PallasBiLSTM(D_IN, D_H, k_param)
    x = jax.random.normal(k_x, (B, T, D_IN), jnp.float32)

    lstm_out, (h_n, c_n) = model(x)
    lstm_out = jax.block_until_ready(lstm_out)
    h_n = jax.block_until_ready(h_n)
    c_n = jax.block_until_ready(c_n)

    assert lstm_out.shape == (B, T, 2 * D_H)
    assert h_n.shape == (2, B, D_H) and c_n.shape == (2, B, D_H)

    # sanity check against a pure-JAX lax.scan reference
    x_tbd = jnp.transpose(x, (1, 0, 2))
    h0_f = jnp.broadcast_to(model.init_h[0], (B, D_H))
    c0_f = jnp.broadcast_to(model.init_c[0], (B, D_H))
    h0_b = jnp.broadcast_to(model.init_h[1], (B, D_H))
    c0_b = jnp.broadcast_to(model.init_c[1], (B, D_H))
    rf_out, rf_h, rf_c = _reference_direction(
        x_tbd, model.w_ih_T[0], model.w_hh_T[0], model.bias[0], h0_f, c0_f, False)
    rb_out, rb_h, rb_c = _reference_direction(
        x_tbd, model.w_ih_T[1], model.w_hh_T[1], model.bias[1], h0_b, c0_b, True)
    ref_out = jnp.transpose(jnp.concatenate([rf_out, rb_out], -1), (1, 0, 2))
    np.testing.assert_allclose(np.asarray(lstm_out), np.asarray(ref_out),
                               atol=1e-4, rtol=1e-4)
    np.testing.assert_allclose(np.asarray(h_n),
                               np.asarray(jnp.stack([rf_h, rb_h], 0)),
                               atol=1e-4, rtol=1e-4)
    np.testing.assert_allclose(np.asarray(c_n),
                               np.asarray(jnp.stack([rf_c, rb_c], 0)),
                               atol=1e-4, rtol=1e-4)

    print("KERNEL_OK")
</pallas_src>

<mosaic_0001>
module attributes {stable_mosaic.version = 11 : i64} {
  func.func @_bilstm_kernel(%arg0: i32, %arg1: i32, %arg2: memref<1x8x2x128xf32, #tpu.memory_space<vmem>>, %arg3: memref<1x32x128xf32, #tpu.memory_space<vmem>>, %arg4: memref<1x2x32xf32, #tpu.memory_space<vmem>>, %arg5: memref<1x2x32xf32, #tpu.memory_space<vmem>>, %arg6: memref<1x8x2x32xf32, #tpu.memory_space<vmem>>, %arg7: memref<1x2x32xf32, #tpu.memory_space<vmem>>, %arg8: memref<1x2x32xf32, #tpu.memory_space<vmem>>, %arg9: memref<2x32xf32, #tpu.memory_space<vmem>>, %arg10: memref<2x32xf32, #tpu.memory_space<vmem>>) attributes {dimension_semantics = [#tpu.dimension_semantics<parallel>, #tpu.dimension_semantics<arbitrary>], iteration_bounds = array<i64: 2, 1>, scalar_prefetch = 0 : i64, scratch_operands = 2 : i64, tpu.core_type = #tpu.core_type<tc>, window_params = [{transform_indices = @transform_0, window_bounds = array<i64: 1, 8, 2, 128>}, {transform_indices = @transform_1, window_bounds = array<i64: 1, 32, 128>}, {transform_indices = @transform_2, window_bounds = array<i64: 1, 2, 32>}, {transform_indices = @transform_3, window_bounds = array<i64: 1, 2, 32>}, {transform_indices = @transform_4, window_bounds = array<i64: 1, 8, 2, 32>}, {transform_indices = @transform_5, window_bounds = array<i64: 1, 2, 32>}, {transform_indices = @transform_6, window_bounds = array<i64: 1, 2, 32>}]} {
    %c0_i32 = arith.constant 0 : i32
    %0 = arith.cmpi eq, %arg1, %c0_i32 : i32
    %1 = arith.extui %0 : i1 to i32
    %c0_i32_0 = arith.constant 0 : i32
    %2 = arith.cmpi ne, %1, %c0_i32_0 : i32
    scf.if %2 {
      %c0_165 = arith.constant 0 : index
      %c0_166 = arith.constant 0 : index
      %c0_167 = arith.constant 0 : index
      %352 = vector.load %arg4[%c0_165, %c0_166, %c0_167] : memref<1x2x32xf32, #tpu.memory_space<vmem>>, vector<1x2x32xf32>
      %353 = vector.shape_cast %352 : vector<1x2x32xf32> to vector<2x32xf32>
      %c0_168 = arith.constant 0 : index
      %c0_169 = arith.constant 0 : index
      %354 = vector.load %arg9[%c0_168, %c0_169] : memref<2x32xf32, #tpu.memory_space<vmem>>, vector<2x32xf32>
      tpu.vector_store %arg9[%c0_168, %c0_169], %353 {strides = array<i32>} : memref<2x32xf32, #tpu.memory_space<vmem>>, vector<2x32xf32>,
      %c0_170 = arith.constant 0 : index
      %c0_171 = arith.constant 0 : index
      %c0_172 = arith.constant 0 : index
      %355 = vector.load %arg5[%c0_170, %c0_171, %c0_172] : memref<1x2x32xf32, #tpu.memory_space<vmem>>, vector<1x2x32xf32>
      %356 = vector.shape_cast %355 : vector<1x2x32xf32> to vector<2x32xf32>
      %c0_173 = arith.constant 0 : index
      %c0_174 = arith.constant 0 : index
      %357 = vector.load %arg10[%c0_173, %c0_174] : memref<2x32xf32, #tpu.memory_space<vmem>>, vector<2x32xf32>
      tpu.vector_store %arg10[%c0_173, %c0_174], %356 {strides = array<i32>} : memref<2x32xf32, #tpu.memory_space<vmem>>, vector<2x32xf32>,
    } else {
    }
    %c0 = arith.constant 0 : index
    %c0_1 = arith.constant 0 : index
    %c0_2 = arith.constant 0 : index
    %3 = vector.load %arg3[%c0, %c0_1, %c0_2] : memref<1x32x128xf32, #tpu.memory_space<vmem>>, vector<1x32x128xf32>
    %4 = vector.shape_cast %3 : vector<1x32x128xf32> to vector<32x128xf32>
    %c0_i32_3 = arith.constant 0 : i32
    %c7_i32 = arith.constant 7 : i32
    %5 = arith.subi %c7_i32, %c0_i32_3 : i32
    %6 = arith.muli %arg0, %5 : i32
    %c1_i32 = arith.constant 1 : i32
    %7 = arith.subi %c1_i32, %arg0 : i32
    %8 = arith.muli %7, %c0_i32_3 : i32
    %9 = arith.addi %6, %8 : i32
    %c0_4 = arith.constant 0 : index
    %10 = arith.index_cast %9 : i32 to index
    %c0_5 = arith.constant 0 : index
    %c0_6 = arith.constant 0 : index
    %11 = vector.load %arg2[%c0_4, %10, %c0_5, %c0_6] : memref<1x8x2x128xf32, #tpu.memory_space<vmem>>, vector<1x1x2x128xf32>
    %12 = vector.shape_cast %11 : vector<1x1x2x128xf32> to vector<2x128xf32>
    %c0_7 = arith.constant 0 : index
    %c0_8 = arith.constant 0 : index
    %13 = vector.load %arg9[%c0_7, %c0_8] : memref<2x32xf32, #tpu.memory_space<vmem>>, vector<2x32xf32>
    %cst = arith.constant dense<0.000000e+00> : vector<2x128xf32>
    %14 = tpu.matmul %13, %4, %cst {dimension_numbers = #tpu.dot_dimension_numbers<[1], [0], [0], [1], [0, 0, 1, 1], [], []>} : vector<2x32xf32>, vector<32x128xf32>, vector<2x128xf32> -> vector<2x128xf32>
    %15 = arith.addf %12, %14 : vector<2x128xf32>
    %16 = vector.extract_strided_slice %15 {offsets = [0, 0], sizes = [2, 32], strides = [1, 1]} : vector<2x128xf32> to vector<2x32xf32>
    %17 = arith.negf %16 : vector<2x32xf32>
    %18 = math.exp %17 : vector<2x32xf32>
    %cst_9 = arith.constant 1.000000e+00 : f32
    %19 = vector.broadcast %cst_9 : f32 to vector<2x32xf32>
    %20 = arith.addf %19, %18 : vector<2x32xf32>
    %21 = arith.divf %19, %20 : vector<2x32xf32>
    %22 = vector.extract_strided_slice %15 {offsets = [0, 32], sizes = [2, 32], strides = [1, 1]} : vector<2x128xf32> to vector<2x32xf32>
    %23 = arith.negf %22 : vector<2x32xf32>
    %24 = math.exp %23 : vector<2x32xf32>
    %cst_10 = arith.constant 1.000000e+00 : f32
    %25 = vector.broadcast %cst_10 : f32 to vector<2x32xf32>
    %26 = arith.addf %25, %24 : vector<2x32xf32>
    %27 = arith.divf %25, %26 : vector<2x32xf32>
    %28 = vector.extract_strided_slice %15 {offsets = [0, 64], sizes = [2, 32], strides = [1, 1]} : vector<2x128xf32> to vector<2x32xf32>
    %29 = math.tanh %28 : vector<2x32xf32>
    %30 = vector.extract_strided_slice %15 {offsets = [0, 96], sizes = [2, 32], strides = [1, 1]} : vector<2x128xf32> to vector<2x32xf32>
    %31 = arith.negf %30 : vector<2x32xf32>
    %32 = math.exp %31 : vector<2x32xf32>
    %cst_11 = arith.constant 1.000000e+00 : f32
    %33 = vector.broadcast %cst_11 : f32 to vector<2x32xf32>
    %34 = arith.addf %33, %32 : vector<2x32xf32>
    %35 = arith.divf %33, %34 : vector<2x32xf32>
    %c0_12 = arith.constant 0 : index
    %c0_13 = arith.constant 0 : index
    %36 = vector.load %arg10[%c0_12, %c0_13] : memref<2x32xf32, #tpu.memory_space<vmem>>, vector<2x32xf32>
    %37 = arith.mulf %27, %36 : vector<2x32xf32>
    %38 = arith.mulf %21, %29 : vector<2x32xf32>
    %39 = arith.addf %37, %38 : vector<2x32xf32>
    %40 = math.tanh %39 : vector<2x32xf32>
    %41 = arith.mulf %35, %40 : vector<2x32xf32>
    %c0_14 = arith.constant 0 : index
    %c0_15 = arith.constant 0 : index
    %42 = vector.load %arg9[%c0_14, %c0_15] : memref<2x32xf32, #tpu.memory_space<vmem>>, vector<2x32xf32>
    tpu.vector_store %arg9[%c0_14, %c0_15], %41 {strides = array<i32>} : memref<2x32xf32, #tpu.memory_space<vmem>>, vector<2x32xf32>,
    %c0_16 = arith.constant 0 : index
    %c0_17 = arith.constant 0 : index
    %43 = vector.load %arg10[%c0_16, %c0_17] : memref<2x32xf32, #tpu.memory_space<vmem>>, vector<2x32xf32>
    tpu.vector_store %arg10[%c0_16, %c0_17], %39 {strides = array<i32>} : memref<2x32xf32, #tpu.memory_space<vmem>>, vector<2x32xf32>,
    %c0_18 = arith.constant 0 : index
    %44 = arith.index_cast %9 : i32 to index
    %c0_19 = arith.constant 0 : index
    %c0_20 = arith.constant 0 : index
    %45 = vector.load %arg6[%c0_18, %44, %c0_19, %c0_20] : memref<1x8x2x32xf32, #tpu.memory_space<vmem>>, vector<1x1x2x32xf32>
    %46 = vector.shape_cast %45 : vector<1x1x2x32xf32> to vector<2x32xf32>
    %47 = vector.shape_cast %41 : vector<2x32xf32> to vector<1x1x2x32xf32>
    tpu.vector_store %arg6[%c0_18, %44, %c0_19, %c0_20], %47 {strides = array<i32>} : memref<1x8x2x32xf32, #tpu.memory_space<vmem>>, vector<1x1x2x32xf32>,
    %c1_i32_21 = arith.constant 1 : i32
    %c7_i32_22 = arith.constant 7 : i32
    %48 = arith.subi %c7_i32_22, %c1_i32_21 : i32
    %49 = arith.muli %arg0, %48 : i32
    %c1_i32_23 = arith.constant 1 : i32
    %50 = arith.subi %c1_i32_23, %arg0 : i32
    %51 = arith.muli %50, %c1_i32_21 : i32
    %52 = arith.addi %49, %51 : i32
    %c0_24 = arith.constant 0 : index
    %53 = arith.index_cast %52 : i32 to index
    %c0_25 = arith.constant 0 : index
    %c0_26 = arith.constant 0 : index
    %54 = vector.load %arg2[%c0_24, %53, %c0_25, %c0_26] : memref<1x8x2x128xf32, #tpu.memory_space<vmem>>, vector<1x1x2x128xf32>
    %55 = vector.shape_cast %54 : vector<1x1x2x128xf32> to vector<2x128xf32>
    %c0_27 = arith.constant 0 : index
    %c0_28 = arith.constant 0 : index
    %56 = vector.load %arg9[%c0_27, %c0_28] : memref<2x32xf32, #tpu.memory_space<vmem>>, vector<2x32xf32>
    %cst_29 = arith.constant dense<0.000000e+00> : vector<2x128xf32>
    %57 = tpu.matmul %56, %4, %cst_29 {dimension_numbers = #tpu.dot_dimension_numbers<[1], [0], [0], [1], [0, 0, 1, 1], [], []>} : vector<2x32xf32>, vector<32x128xf32>, vector<2x128xf32> -> vector<2x128xf32>
    %58 = arith.addf %55, %57 : vector<2x128xf32>
    %59 = vector.extract_strided_slice %58 {offsets = [0, 0], sizes = [2, 32], strides = [1, 1]} : vector<2x128xf32> to vector<2x32xf32>
    %60 = arith.negf %59 : vector<2x32xf32>
    %61 = math.exp %60 : vector<2x32xf32>
    %cst_30 = arith.constant 1.000000e+00 : f32
    %62 = vector.broadcast %cst_30 : f32 to vector<2x32xf32>
    %63 = arith.addf %62, %61 : vector<2x32xf32>
    %64 = arith.divf %62, %63 : vector<2x32xf32>
    %65 = vector.extract_strided_slice %58 {offsets = [0, 32], sizes = [2, 32], strides = [1, 1]} : vector<2x128xf32> to vector<2x32xf32>
    %66 = arith.negf %65 : vector<2x32xf32>
    %67 = math.exp %66 : vector<2x32xf32>
    %cst_31 = arith.constant 1.000000e+00 : f32
    %68 = vector.broadcast %cst_31 : f32 to vector<2x32xf32>
    %69 = arith.addf %68, %67 : vector<2x32xf32>
    %70 = arith.divf %68, %69 : vector<2x32xf32>
    %71 = vector.extract_strided_slice %58 {offsets = [0, 64], sizes = [2, 32], strides = [1, 1]} : vector<2x128xf32> to vector<2x32xf32>
    %72 = math.tanh %71 : vector<2x32xf32>
    %73 = vector.extract_strided_slice %58 {offsets = [0, 96], sizes = [2, 32], strides = [1, 1]} : vector<2x128xf32> to vector<2x32xf32>
    %74 = arith.negf %73 : vector<2x32xf32>
    %75 = math.exp %74 : vector<2x32xf32>
    %cst_32 = arith.constant 1.000000e+00 : f32
    %76 = vector.broadcast %cst_32 : f32 to vector<2x32xf32>
    %77 = arith.addf %76, %75 : vector<2x32xf32>
    %78 = arith.divf %76, %77 : vector<2x32xf32>
    %c0_33 = arith.constant 0 : index
    %c0_34 = arith.constant 0 : index
    %79 = vector.load %arg10[%c0_33, %c0_34] : memref<2x32xf32, #tpu.memory_space<vmem>>, vector<2x32xf32>
    %80 = arith.mulf %70, %79 : vector<2x32xf32>
    %81 = arith.mulf %64, %72 : vector<2x32xf32>
    %82 = arith.addf %80, %81 : vector<2x32xf32>
    %83 = math.tanh %82 : vector<2x32xf32>
    %84 = arith.mulf %78, %83 : vector<2x32xf32>
    %c0_35 = arith.constant 0 : index
    %c0_36 = arith.constant 0 : index
    %85 = vector.load %arg9[%c0_35, %c0_36] : memref<2x32xf32, #tpu.memory_space<vmem>>, vector<2x32xf32>
    tpu.vector_store %arg9[%c0_35, %c0_36], %84 {strides = array<i32>} : memref<2x32xf32, #tpu.memory_space<vmem>>, vector<2x32xf32>,
    %c0_37 = arith.constant 0 : index
    %c0_38 = arith.constant 0 : index
    %86 = vector.load %arg10[%c0_37, %c0_38] : memref<2x32xf32, #tpu.memory_space<vmem>>, vector<2x32xf32>
    tpu.vector_store %arg10[%c0_37, %c0_38], %82 {strides = array<i32>} : memref<2x32xf32, #tpu.memory_space<vmem>>, vector<2x32xf32>,
    %c0_39 = arith.constant 0 : index
    %87 = arith.index_cast %52 : i32 to index
    %c0_40 = arith.constant 0 : index
    %c0_41 = arith.constant 0 : index
    %88 = vector.load %arg6[%c0_39, %87, %c0_40, %c0_41] : memref<1x8x2x32xf32, #tpu.memory_space<vmem>>, vector<1x1x2x32xf32>
    %89 = vector.shape_cast %88 : vector<1x1x2x32xf32> to vector<2x32xf32>
    %90 = vector.shape_cast %84 : vector<2x32xf32> to vector<1x1x2x32xf32>
    tpu.vector_store %arg6[%c0_39, %87, %c0_40, %c0_41], %90 {strides = array<i32>} : memref<1x8x2x32xf32, #tpu.memory_space<vmem>>, vector<1x1x2x32xf32>,
    %c2_i32 = arith.constant 2 : i32
    %c7_i32_42 = arith.constant 7 : i32
    %91 = arith.subi %c7_i32_42, %c2_i32 : i32
    %92 = arith.muli %arg0, %91 : i32
    %c1_i32_43 = arith.constant 1 : i32
    %93 = arith.subi %c1_i32_43, %arg0 : i32
    %94 = arith.muli %93, %c2_i32 : i32
    %95 = arith.addi %92, %94 : i32
    %c0_44 = arith.constant 0 : index
    %96 = arith.index_cast %95 : i32 to index
    %c0_45 = arith.constant 0 : index
    %c0_46 = arith.constant 0 : index
    %97 = vector.load %arg2[%c0_44, %96, %c0_45, %c0_46] : memref<1x8x2x128xf32, #tpu.memory_space<vmem>>, vector<1x1x2x128xf32>
    %98 = vector.shape_cast %97 : vector<1x1x2x128xf32> to vector<2x128xf32>
    %c0_47 = arith.constant 0 : index
    %c0_48 = arith.constant 0 : index
    %99 = vector.load %arg9[%c0_47, %c0_48] : memref<2x32xf32, #tpu.memory_space<vmem>>, vector<2x32xf32>
    %cst_49 = arith.constant dense<0.000000e+00> : vector<2x128xf32>
    %100 = tpu.matmul %99, %4, %cst_49 {dimension_numbers = #tpu.dot_dimension_numbers<[1], [0], [0], [1], [0, 0, 1, 1], [], []>} : vector<2x32xf32>, vector<32x128xf32>, vector<2x128xf32> -> vector<2x128xf32>
    %101 = arith.addf %98, %100 : vector<2x128xf32>
    %102 = vector.extract_strided_slice %101 {offsets = [0, 0], sizes = [2, 32], strides = [1, 1]} : vector<2x128xf32> to vector<2x32xf32>
    %103 = arith.negf %102 : vector<2x32xf32>
    %104 = math.exp %103 : vector<2x32xf32>
    %cst_50 = arith.constant 1.000000e+00 : f32
    %105 = vector.broadcast %cst_50 : f32 to vector<2x32xf32>
    %106 = arith.addf %105, %104 : vector<2x32xf32>
    %107 = arith.divf %105, %106 : vector<2x32xf32>
    %108 = vector.extract_strided_slice %101 {offsets = [0, 32], sizes = [2, 32], strides = [1, 1]} : vector<2x128xf32> to vector<2x32xf32>
    %109 = arith.negf %108 : vector<2x32xf32>
    %110 = math.exp %109 : vector<2x32xf32>
    %cst_51 = arith.constant 1.000000e+00 : f32
    %111 = vector.broadcast %cst_51 : f32 to vector<2x32xf32>
    %112 = arith.addf %111, %110 : vector<2x32xf32>
    %113 = arith.divf %111, %112 : vector<2x32xf32>
    %114 = vector.extract_strided_slice %101 {offsets = [0, 64], sizes = [2, 32], strides = [1, 1]} : vector<2x128xf32> to vector<2x32xf32>
    %115 = math.tanh %114 : vector<2x32xf32>
    %116 = vector.extract_strided_slice %101 {offsets = [0, 96], sizes = [2, 32], strides = [1, 1]} : vector<2x128xf32> to vector<2x32xf32>
    %117 = arith.negf %116 : vector<2x32xf32>
    %118 = math.exp %117 : vector<2x32xf32>
    %cst_52 = arith.constant 1.000000e+00 : f32
    %119 = vector.broadcast %cst_52 : f32 to vector<2x32xf32>
    %120 = arith.addf %119, %118 : vector<2x32xf32>
    %121 = arith.divf %119, %120 : vector<2x32xf32>
    %c0_53 = arith.constant 0 : index
    %c0_54 = arith.constant 0 : index
    %122 = vector.load %arg10[%c0_53, %c0_54] : memref<2x32xf32, #tpu.memory_space<vmem>>, vector<2x32xf32>
    %123 = arith.mulf %113, %122 : vector<2x32xf32>
    %124 = arith.mulf %107, %115 : vector<2x32xf32>
    %125 = arith.addf %123, %124 : vector<2x32xf32>
    %126 = math.tanh %125 : vector<2x32xf32>
    %127 = arith.mulf %121, %126 : vector<2x32xf32>
    %c0_55 = arith.constant 0 : index
    %c0_56 = arith.constant 0 : index
    %128 = vector.load %arg9[%c0_55, %c0_56] : memref<2x32xf32, #tpu.memory_space<vmem>>, vector<2x32xf32>
    tpu.vector_store %arg9[%c0_55, %c0_56], %127 {strides = array<i32>} : memref<2x32xf32, #tpu.memory_space<vmem>>, vector<2x32xf32>,
    %c0_57 = arith.constant 0 : index
    %c0_58 = arith.constant 0 : index
    %129 = vector.load %arg10[%c0_57, %c0_58] : memref<2x32xf32, #tpu.memory_space<vmem>>, vector<2x32xf32>
    tpu.vector_store %arg10[%c0_57, %c0_58], %125 {strides = array<i32>} : memref<2x32xf32, #tpu.memory_space<vmem>>, vector<2x32xf32>,
    %c0_59 = arith.constant 0 : index
    %130 = arith.index_cast %95 : i32 to index
    %c0_60 = arith.constant 0 : index
    %c0_61 = arith.constant 0 : index
    %131 = vector.load %arg6[%c0_59, %130, %c0_60, %c0_61] : memref<1x8x2x32xf32, #tpu.memory_space<vmem>>, vector<1x1x2x32xf32>
    %132 = vector.shape_cast %131 : vector<1x1x2x32xf32> to vector<2x32xf32>
    %133 = vector.shape_cast %127 : vector<2x32xf32> to vector<1x1x2x32xf32>
    tpu.vector_store %arg6[%c0_59, %130, %c0_60, %c0_61], %133 {strides = array<i32>} : memref<1x8x2x32xf32, #tpu.memory_space<vmem>>, vector<1x1x2x32xf32>,
    %c3_i32 = arith.constant 3 : i32
    %c7_i32_62 = arith.constant 7 : i32
    %134 = arith.subi %c7_i32_62, %c3_i32 : i32
    %135 = arith.muli %arg0, %134 : i32
    %c1_i32_63 = arith.constant 1 : i32
    %136 = arith.subi %c1_i32_63, %arg0 : i32
    %137 = arith.muli %136, %c3_i32 : i32
    %138 = arith.addi %135, %137 : i32
    %c0_64 = arith.constant 0 : index
    %139 = arith.index_cast %138 : i32 to index
    %c0_65 = arith.constant 0 : index
    %c0_66 = arith.constant 0 : index
    %140 = vector.load %arg2[%c0_64, %139, %c0_65, %c0_66] : memref<1x8x2x128xf32, #tpu.memory_space<vmem>>, vector<1x1x2x128xf32>
    %141 = vector.shape_cast %140 : vector<1x1x2x128xf32> to vector<2x128xf32>
    %c0_67 = arith.constant 0 : index
    %c0_68 = arith.constant 0 : index
    %142 = vector.load %arg9[%c0_67, %c0_68] : memref<2x32xf32, #tpu.memory_space<vmem>>, vector<2x32xf32>
    %cst_69 = arith.constant dense<0.000000e+00> : vector<2x128xf32>
    %143 = tpu.matmul %142, %4, %cst_69 {dimension_numbers = #tpu.dot_dimension_numbers<[1], [0], [0], [1], [0, 0, 1, 1], [], []>} : vector<2x32xf32>, vector<32x128xf32>, vector<2x128xf32> -> vector<2x128xf32>
    %144 = arith.addf %141, %143 : vector<2x128xf32>
    %145 = vector.extract_strided_slice %144 {offsets = [0, 0], sizes = [2, 32], strides = [1, 1]} : vector<2x128xf32> to vector<2x32xf32>
    %146 = arith.negf %145 : vector<2x32xf32>
    %147 = math.exp %146 : vector<2x32xf32>
    %cst_70 = arith.constant 1.000000e+00 : f32
    %148 = vector.broadcast %cst_70 : f32 to vector<2x32xf32>
    %149 = arith.addf %148, %147 : vector<2x32xf32>
    %150 = arith.divf %148, %149 : vector<2x32xf32>
    %151 = vector.extract_strided_slice %144 {offsets = [0, 32], sizes = [2, 32], strides = [1, 1]} : vector<2x128xf32> to vector<2x32xf32>
    %152 = arith.negf %151 : vector<2x32xf32>
    %153 = math.exp %152 : vector<2x32xf32>
    %cst_71 = arith.constant 1.000000e+00 : f32
    %154 = vector.broadcast %cst_71 : f32 to vector<2x32xf32>
    %155 = arith.addf %154, %153 : vector<2x32xf32>
    %156 = arith.divf %154, %155 : vector<2x32xf32>
    %157 = vector.extract_strided_slice %144 {offsets = [0, 64], sizes = [2, 32], strides = [1, 1]} : vector<2x128xf32> to vector<2x32xf32>
    %158 = math.tanh %157 : vector<2x32xf32>
    %159 = vector.extract_strided_slice %144 {offsets = [0, 96], sizes = [2, 32], strides = [1, 1]} : vector<2x128xf32> to vector<2x32xf32>
    %160 = arith.negf %159 : vector<2x32xf32>
    %161 = math.exp %160 : vector<2x32xf32>
    %cst_72 = arith.constant 1.000000e+00 : f32
    %162 = vector.broadcast %cst_72 : f32 to vector<2x32xf32>
    %163 = arith.addf %162, %161 : vector<2x32xf32>
    %164 = arith.divf %162, %163 : vector<2x32xf32>
    %c0_73 = arith.constant 0 : index
    %c0_74 = arith.constant 0 : index
    %165 = vector.load %arg10[%c0_73, %c0_74] : memref<2x32xf32, #tpu.memory_space<vmem>>, vector<2x32xf32>
    %166 = arith.mulf %156, %165 : vector<2x32xf32>
    %167 = arith.mulf %150, %158 : vector<2x32xf32>
    %168 = arith.addf %166, %167 : vector<2x32xf32>
    %169 = math.tanh %168 : vector<2x32xf32>
    %170 = arith.mulf %164, %169 : vector<2x32xf32>
    %c0_75 = arith.constant 0 : index
    %c0_76 = arith.constant 0 : index
    %171 = vector.load %arg9[%c0_75, %c0_76] : memref<2x32xf32, #tpu.memory_space<vmem>>, vector<2x32xf32>
    tpu.vector_store %arg9[%c0_75, %c0_76], %170 {strides = array<i32>} : memref<2x32xf32, #tpu.memory_space<vmem>>, vector<2x32xf32>,
    %c0_77 = arith.constant 0 : index
    %c0_78 = arith.constant 0 : index
    %172 = vector.load %arg10[%c0_77, %c0_78] : memref<2x32xf32, #tpu.memory_space<vmem>>, vector<2x32xf32>
    tpu.vector_store %arg10[%c0_77, %c0_78], %168 {strides = array<i32>} : memref<2x32xf32, #tpu.memory_space<vmem>>, vector<2x32xf32>,
    %c0_79 = arith.constant 0 : index
    %173 = arith.index_cast %138 : i32 to index
    %c0_80 = arith.constant 0 : index
    %c0_81 = arith.constant 0 : index
    %174 = vector.load %arg6[%c0_79, %173, %c0_80, %c0_81] : memref<1x8x2x32xf32, #tpu.memory_space<vmem>>, vector<1x1x2x32xf32>
    %175 = vector.shape_cast %174 : vector<1x1x2x32xf32> to vector<2x32xf32>
    %176 = vector.shape_cast %170 : vector<2x32xf32> to vector<1x1x2x32xf32>
    tpu.vector_store %arg6[%c0_79, %173, %c0_80, %c0_81], %176 {strides = array<i32>} : memref<1x8x2x32xf32, #tpu.memory_space<vmem>>, vector<1x1x2x32xf32>,
    %c4_i32 = arith.constant 4 : i32
    %c7_i32_82 = arith.constant 7 : i32
    %177 = arith.subi %c7_i32_82, %c4_i32 : i32
    %178 = arith.muli %arg0, %177 : i32
    %c1_i32_83 = arith.constant 1 : i32
    %179 = arith.subi %c1_i32_83, %arg0 : i32
    %180 = arith.muli %179, %c4_i32 : i32
    %181 = arith.addi %178, %180 : i32
    %c0_84 = arith.constant 0 : index
    %182 = arith.index_cast %181 : i32 to index
    %c0_85 = arith.constant 0 : index
    %c0_86 = arith.constant 0 : index
    %183 = vector.load %arg2[%c0_84, %182, %c0_85, %c0_86] : memref<1x8x2x128xf32, #tpu.memory_space<vmem>>, vector<1x1x2x128xf32>
    %184 = vector.shape_cast %183 : vector<1x1x2x128xf32> to vector<2x128xf32>
    %c0_87 = arith.constant 0 : index
    %c0_88 = arith.constant 0 : index
    %185 = vector.load %arg9[%c0_87, %c0_88] : memref<2x32xf32, #tpu.memory_space<vmem>>, vector<2x32xf32>
    %cst_89 = arith.constant dense<0.000000e+00> : vector<2x128xf32>
    %186 = tpu.matmul %185, %4, %cst_89 {dimension_numbers = #tpu.dot_dimension_numbers<[1], [0], [0], [1], [0, 0, 1, 1], [], []>} : vector<2x32xf32>, vector<32x128xf32>, vector<2x128xf32> -> vector<2x128xf32>
    %187 = arith.addf %184, %186 : vector<2x128xf32>
    %188 = vector.extract_strided_slice %187 {offsets = [0, 0], sizes = [2, 32], strides = [1, 1]} : vector<2x128xf32> to vector<2x32xf32>
    %189 = arith.negf %188 : vector<2x32xf32>
    %190 = math.exp %189 : vector<2x32xf32>
    %cst_90 = arith.constant 1.000000e+00 : f32
    %191 = vector.broadcast %cst_90 : f32 to vector<2x32xf32>
    %192 = arith.addf %191, %190 : vector<2x32xf32>
    %193 = arith.divf %191, %192 : vector<2x32xf32>
    %194 = vector.extract_strided_slice %187 {offsets = [0, 32], sizes = [2, 32], strides = [1, 1]} : vector<2x128xf32> to vector<2x32xf32>
    %195 = arith.negf %194 : vector<2x32xf32>
    %196 = math.exp %195 : vector<2x32xf32>
    %cst_91 = arith.constant 1.000000e+00 : f32
    %197 = vector.broadcast %cst_91 : f32 to vector<2x32xf32>
    %198 = arith.addf %197, %196 : vector<2x32xf32>
    %199 = arith.divf %197, %198 : vector<2x32xf32>
    %200 = vector.extract_strided_slice %187 {offsets = [0, 64], sizes = [2, 32], strides = [1, 1]} : vector<2x128xf32> to vector<2x32xf32>
    %201 = math.tanh %200 : vector<2x32xf32>
    %202 = vector.extract_strided_slice %187 {offsets = [0, 96], sizes = [2, 32], strides = [1, 1]} : vector<2x128xf32> to vector<2x32xf32>
    %203 = arith.negf %202 : vector<2x32xf32>
    %204 = math.exp %203 : vector<2x32xf32>
    %cst_92 = arith.constant 1.000000e+00 : f32
    %205 = vector.broadcast %cst_92 : f32 to vector<2x32xf32>
    %206 = arith.addf %205, %204 : vector<2x32xf32>
    %207 = arith.divf %205, %206 : vector<2x32xf32>
    %c0_93 = arith.constant 0 : index
    %c0_94 = arith.constant 0 : index
    %208 = vector.load %arg10[%c0_93, %c0_94] : memref<2x32xf32, #tpu.memory_space<vmem>>, vector<2x32xf32>
    %209 = arith.mulf %199, %208 : vector<2x32xf32>
    %210 = arith.mulf %193, %201 : vector<2x32xf32>
    %211 = arith.addf %209, %210 : vector<2x32xf32>
    %212 = math.tanh %211 : vector<2x32xf32>
    %213 = arith.mulf %207, %212 : vector<2x32xf32>
    %c0_95 = arith.constant 0 : index
    %c0_96 = arith.constant 0 : index
    %214 = vector.load %arg9[%c0_95, %c0_96] : memref<2x32xf32, #tpu.memory_space<vmem>>, vector<2x32xf32>
    tpu.vector_store %arg9[%c0_95, %c0_96], %213 {strides = array<i32>} : memref<2x32xf32, #tpu.memory_space<vmem>>, vector<2x32xf32>,
    %c0_97 = arith.constant 0 : index
    %c0_98 = arith.constant 0 : index
    %215 = vector.load %arg10[%c0_97, %c0_98] : memref<2x32xf32, #tpu.memory_space<vmem>>, vector<2x32xf32>
    tpu.vector_store %arg10[%c0_97, %c0_98], %211 {strides = array<i32>} : memref<2x32xf32, #tpu.memory_space<vmem>>, vector<2x32xf32>,
    %c0_99 = arith.constant 0 : index
    %216 = arith.index_cast %181 : i32 to index
    %c0_100 = arith.constant 0 : index
    %c0_101 = arith.constant 0 : index
    %217 = vector.load %arg6[%c0_99, %216, %c0_100, %c0_101] : memref<1x8x2x32xf32, #tpu.memory_space<vmem>>, vector<1x1x2x32xf32>
    %218 = vector.shape_cast %217 : vector<1x1x2x32xf32> to vector<2x32xf32>
    %219 = vector.shape_cast %213 : vector<2x32xf32> to vector<1x1x2x32xf32>
    tpu.vector_store %arg6[%c0_99, %216, %c0_100, %c0_101], %219 {strides = array<i32>} : memref<1x8x2x32xf32, #tpu.memory_space<vmem>>, vector<1x1x2x32xf32>,
    %c5_i32 = arith.constant 5 : i32
    %c7_i32_102 = arith.constant 7 : i32
    %220 = arith.subi %c7_i32_102, %c5_i32 : i32
    %221 = arith.muli %arg0, %220 : i32
    %c1_i32_103 = arith.constant 1 : i32
    %222 = arith.subi %c1_i32_103, %arg0 : i32
    %223 = arith.muli %222, %c5_i32 : i32
    %224 = arith.addi %221, %223 : i32
    %c0_104 = arith.constant 0 : index
    %225 = arith.index_cast %224 : i32 to index
    %c0_105 = arith.constant 0 : index
    %c0_106 = arith.constant 0 : index
    %226 = vector.load %arg2[%c0_104, %225, %c0_105, %c0_106] : memref<1x8x2x128xf32, #tpu.memory_space<vmem>>, vector<1x1x2x128xf32>
    %227 = vector.shape_cast %226 : vector<1x1x2x128xf32> to vector<2x128xf32>
    %c0_107 = arith.constant 0 : index
    %c0_108 = arith.constant 0 : index
    %228 = vector.load %arg9[%c0_107, %c0_108] : memref<2x32xf32, #tpu.memory_space<vmem>>, vector<2x32xf32>
    %cst_109 = arith.constant dense<0.000000e+00> : vector<2x128xf32>
    %229 = tpu.matmul %228, %4, %cst_109 {dimension_numbers = #tpu.dot_dimension_numbers<[1], [0], [0], [1], [0, 0, 1, 1], [], []>} : vector<2x32xf32>, vector<32x128xf32>, vector<2x128xf32> -> vector<2x128xf32>
    %230 = arith.addf %227, %229 : vector<2x128xf32>
    %231 = vector.extract_strided_slice %230 {offsets = [0, 0], sizes = [2, 32], strides = [1, 1]} : vector<2x128xf32> to vector<2x32xf32>
    %232 = arith.negf %231 : vector<2x32xf32>
    %233 = math.exp %232 : vector<2x32xf32>
    %cst_110 = arith.constant 1.000000e+00 : f32
    %234 = vector.broadcast %cst_110 : f32 to vector<2x32xf32>
    %235 = arith.addf %234, %233 : vector<2x32xf32>
    %236 = arith.divf %234, %235 : vector<2x32xf32>
    %237 = vector.extract_strided_slice %230 {offsets = [0, 32], sizes = [2, 32], strides = [1, 1]} : vector<2x128xf32> to vector<2x32xf32>
    %238 = arith.negf %237 : vector<2x32xf32>
    %239 = math.exp %238 : vector<2x32xf32>
    %cst_111 = arith.constant 1.000000e+00 : f32
    %240 = vector.broadcast %cst_111 : f32 to vector<2x32xf32>
    %241 = arith.addf %240, %239 : vector<2x32xf32>
    %242 = arith.divf %240, %241 : vector<2x32xf32>
    %243 = vector.extract_strided_slice %230 {offsets = [0, 64], sizes = [2, 32], strides = [1, 1]} : vector<2x128xf32> to vector<2x32xf32>
    %244 = math.tanh %243 : vector<2x32xf32>
    %245 = vector.extract_strided_slice %230 {offsets = [0, 96], sizes = [2, 32], strides = [1, 1]} : vector<2x128xf32> to vector<2x32xf32>
    %246 = arith.negf %245 : vector<2x32xf32>
    %247 = math.exp %246 : vector<2x32xf32>
    %cst_112 = arith.constant 1.000000e+00 : f32
    %248 = vector.broadcast %cst_112 : f32 to vector<2x32xf32>
    %249 = arith.addf %248, %247 : vector<2x32xf32>
    %250 = arith.divf %248, %249 : vector<2x32xf32>
    %c0_113 = arith.constant 0 : index
    %c0_114 = arith.constant 0 : index
    %251 = vector.load %arg10[%c0_113, %c0_114] : memref<2x32xf32, #tpu.memory_space<vmem>>, vector<2x32xf32>
    %252 = arith.mulf %242, %251 : vector<2x32xf32>
    %253 = arith.mulf %236, %244 : vector<2x32xf32>
    %254 = arith.addf %252, %253 : vector<2x32xf32>
    %255 = math.tanh %254 : vector<2x32xf32>
    %256 = arith.mulf %250, %255 : vector<2x32xf32>
    %c0_115 = arith.constant 0 : index
    %c0_116 = arith.constant 0 : index
    %257 = vector.load %arg9[%c0_115, %c0_116] : memref<2x32xf32, #tpu.memory_space<vmem>>, vector<2x32xf32>
    tpu.vector_store %arg9[%c0_115, %c0_116], %256 {strides = array<i32>} : memref<2x32xf32, #tpu.memory_space<vmem>>, vector<2x32xf32>,
    %c0_117 = arith.constant 0 : index
    %c0_118 = arith.constant 0 : index
    %258 = vector.load %arg10[%c0_117, %c0_118] : memref<2x32xf32, #tpu.memory_space<vmem>>, vector<2x32xf32>
    tpu.vector_store %arg10[%c0_117, %c0_118], %254 {strides = array<i32>} : memref<2x32xf32, #tpu.memory_space<vmem>>, vector<2x32xf32>,
    %c0_119 = arith.constant 0 : index
    %259 = arith.index_cast %224 : i32 to index
    %c0_120 = arith.constant 0 : index
    %c0_121 = arith.constant 0 : index
    %260 = vector.load %arg6[%c0_119, %259, %c0_120, %c0_121] : memref<1x8x2x32xf32, #tpu.memory_space<vmem>>, vector<1x1x2x32xf32>
    %261 = vector.shape_cast %260 : vector<1x1x2x32xf32> to vector<2x32xf32>
    %262 = vector.shape_cast %256 : vector<2x32xf32> to vector<1x1x2x32xf32>
    tpu.vector_store %arg6[%c0_119, %259, %c0_120, %c0_121], %262 {strides = array<i32>} : memref<1x8x2x32xf32, #tpu.memory_space<vmem>>, vector<1x1x2x32xf32>,
    %c6_i32 = arith.constant 6 : i32
    %c7_i32_122 = arith.constant 7 : i32
    %263 = arith.subi %c7_i32_122, %c6_i32 : i32
    %264 = arith.muli %arg0, %263 : i32
    %c1_i32_123 = arith.constant 1 : i32
    %265 = arith.subi %c1_i32_123, %arg0 : i32
    %266 = arith.muli %265, %c6_i32 : i32
    %267 = arith.addi %264, %266 : i32
    %c0_124 = arith.constant 0 : index
    %268 = arith.index_cast %267 : i32 to index
    %c0_125 = arith.constant 0 : index
    %c0_126 = arith.constant 0 : index
    %269 = vector.load %arg2[%c0_124, %268, %c0_125, %c0_126] : memref<1x8x2x128xf32, #tpu.memory_space<vmem>>, vector<1x1x2x128xf32>
    %270 = vector.shape_cast %269 : vector<1x1x2x128xf32> to vector<2x128xf32>
    %c0_127 = arith.constant 0 : index
    %c0_128 = arith.constant 0 : index
    %271 = vector.load %arg9[%c0_127, %c0_128] : memref<2x32xf32, #tpu.memory_space<vmem>>, vector<2x32xf32>
    %cst_129 = arith.constant dense<0.000000e+00> : vector<2x128xf32>
    %272 = tpu.matmul %271, %4, %cst_129 {dimension_numbers = #tpu.dot_dimension_numbers<[1], [0], [0], [1], [0, 0, 1, 1], [], []>} : vector<2x32xf32>, vector<32x128xf32>, vector<2x128xf32> -> vector<2x128xf32>
    %273 = arith.addf %270, %272 : vector<2x128xf32>
    %274 = vector.extract_strided_slice %273 {offsets = [0, 0], sizes = [2, 32], strides = [1, 1]} : vector<2x128xf32> to vector<2x32xf32>
    %275 = arith.negf %274 : vector<2x32xf32>
    %276 = math.exp %275 : vector<2x32xf32>
    %cst_130 = arith.constant 1.000000e+00 : f32
    %277 = vector.broadcast %cst_130 : f32 to vector<2x32xf32>
    %278 = arith.addf %277, %276 : vector<2x32xf32>
    %279 = arith.divf %277, %278 : vector<2x32xf32>
    %280 = vector.extract_strided_slice %273 {offsets = [0, 32], sizes = [2, 32], strides = [1, 1]} : vector<2x128xf32> to vector<2x32xf32>
    %281 = arith.negf %280 : vector<2x32xf32>
    %282 = math.exp %281 : vector<2x32xf32>
    %cst_131 = arith.constant 1.000000e+00 : f32
    %283 = vector.broadcast %cst_131 : f32 to vector<2x32xf32>
    %284 = arith.addf %283, %282 : vector<2x32xf32>
    %285 = arith.divf %283, %284 : vector<2x32xf32>
    %286 = vector.extract_strided_slice %273 {offsets = [0, 64], sizes = [2, 32], strides = [1, 1]} : vector<2x128xf32> to vector<2x32xf32>
    %287 = math.tanh %286 : vector<2x32xf32>
    %288 = vector.extract_strided_slice %273 {offsets = [0, 96], sizes = [2, 32], strides = [1, 1]} : vector<2x128xf32> to vector<2x32xf32>
    %289 = arith.negf %288 : vector<2x32xf32>
    %290 = math.exp %289 : vector<2x32xf32>
    %cst_132 = arith.constant 1.000000e+00 : f32
    %291 = vector.broadcast %cst_132 : f32 to vector<2x32xf32>
    %292 = arith.addf %291, %290 : vector<2x32xf32>
    %293 = arith.divf %291, %292 : vector<2x32xf32>
    %c0_133 = arith.constant 0 : index
    %c0_134 = arith.constant 0 : index
    %294 = vector.load %arg10[%c0_133, %c0_134] : memref<2x32xf32, #tpu.memory_space<vmem>>, vector<2x32xf32>
    %295 = arith.mulf %285, %294 : vector<2x32xf32>
    %296 = arith.mulf %279, %287 : vector<2x32xf32>
    %297 = arith.addf %295, %296 : vector<2x32xf32>
    %298 = math.tanh %297 : vector<2x32xf32>
    %299 = arith.mulf %293, %298 : vector<2x32xf32>
    %c0_135 = arith.constant 0 : index
    %c0_136 = arith.constant 0 : index
    %300 = vector.load %arg9[%c0_135, %c0_136] : memref<2x32xf32, #tpu.memory_space<vmem>>, vector<2x32xf32>
    tpu.vector_store %arg9[%c0_135, %c0_136], %299 {strides = array<i32>} : memref<2x32xf32, #tpu.memory_space<vmem>>, vector<2x32xf32>,
    %c0_137 = arith.constant 0 : index
    %c0_138 = arith.constant 0 : index
    %301 = vector.load %arg10[%c0_137, %c0_138] : memref<2x32xf32, #tpu.memory_space<vmem>>, vector<2x32xf32>
    tpu.vector_store %arg10[%c0_137, %c0_138], %297 {strides = array<i32>} : memref<2x32xf32, #tpu.memory_space<vmem>>, vector<2x32xf32>,
    %c0_139 = arith.constant 0 : index
    %302 = arith.index_cast %267 : i32 to index
    %c0_140 = arith.constant 0 : index
    %c0_141 = arith.constant 0 : index
    %303 = vector.load %arg6[%c0_139, %302, %c0_140, %c0_141] : memref<1x8x2x32xf32, #tpu.memory_space<vmem>>, vector<1x1x2x32xf32>
    %304 = vector.shape_cast %303 : vector<1x1x2x32xf32> to vector<2x32xf32>
    %305 = vector.shape_cast %299 : vector<2x32xf32> to vector<1x1x2x32xf32>
    tpu.vector_store %arg6[%c0_139, %302, %c0_140, %c0_141], %305 {strides = array<i32>} : memref<1x8x2x32xf32, #tpu.memory_space<vmem>>, vector<1x1x2x32xf32>,
    %c7_i32_142 = arith.constant 7 : i32
    %c7_i32_143 = arith.constant 7 : i32
    %306 = arith.subi %c7_i32_143, %c7_i32_142 : i32
    %307 = arith.muli %arg0, %306 : i32
    %c1_i32_144 = arith.constant 1 : i32
    %308 = arith.subi %c1_i32_144, %arg0 : i32
    %309 = arith.muli %308, %c7_i32_142 : i32
    %310 = arith.addi %307, %309 : i32
    %c0_145 = arith.constant 0 : index
    %311 = arith.index_cast %310 : i32 to index
    %c0_146 = arith.constant 0 : index
    %c0_147 = arith.constant 0 : index
    %312 = vector.load %arg2[%c0_145, %311, %c0_146, %c0_147] : memref<1x8x2x128xf32, #tpu.memory_space<vmem>>, vector<1x1x2x128xf32>
    %313 = vector.shape_cast %312 : vector<1x1x2x128xf32> to vector<2x128xf32>
    %c0_148 = arith.constant 0 : index
    %c0_149 = arith.constant 0 : index
    %314 = vector.load %arg9[%c0_148, %c0_149] : memref<2x32xf32, #tpu.memory_space<vmem>>, vector<2x32xf32>
    %cst_150 = arith.constant dense<0.000000e+00> : vector<2x128xf32>
    %315 = tpu.matmul %314, %4, %cst_150 {dimension_numbers = #tpu.dot_dimension_numbers<[1], [0], [0], [1], [0, 0, 1, 1], [], []>} : vector<2x32xf32>, vector<32x128xf32>, vector<2x128xf32> -> vector<2x128xf32>
    %316 = arith.addf %313, %315 : vector<2x128xf32>
    %317 = vector.extract_strided_slice %316 {offsets = [0, 0], sizes = [2, 32], strides = [1, 1]} : vector<2x128xf32> to vector<2x32xf32>
    %318 = arith.negf %317 : vector<2x32xf32>
    %319 = math.exp %318 : vector<2x32xf32>
    %cst_151 = arith.constant 1.000000e+00 : f32
    %320 = vector.broadcast %cst_151 : f32 to vector<2x32xf32>
    %321 = arith.addf %320, %319 : vector<2x32xf32>
    %322 = arith.divf %320, %321 : vector<2x32xf32>
    %323 = vector.extract_strided_slice %316 {offsets = [0, 32], sizes = [2, 32], strides = [1, 1]} : vector<2x128xf32> to vector<2x32xf32>
    %324 = arith.negf %323 : vector<2x32xf32>
    %325 = math.exp %324 : vector<2x32xf32>
    %cst_152 = arith.constant 1.000000e+00 : f32
    %326 = vector.broadcast %cst_152 : f32 to vector<2x32xf32>
    %327 = arith.addf %326, %325 : vector<2x32xf32>
    %328 = arith.divf %326, %327 : vector<2x32xf32>
    %329 = vector.extract_strided_slice %316 {offsets = [0, 64], sizes = [2, 32], strides = [1, 1]} : vector<2x128xf32> to vector<2x32xf32>
    %330 = math.tanh %329 : vector<2x32xf32>
    %331 = vector.extract_strided_slice %316 {offsets = [0, 96], sizes = [2, 32], strides = [1, 1]} : vector<2x128xf32> to vector<2x32xf32>
    %332 = arith.negf %331 : vector<2x32xf32>
    %333 = math.exp %332 : vector<2x32xf32>
    %cst_153 = arith.constant 1.000000e+00 : f32
    %334 = vector.broadcast %cst_153 : f32 to vector<2x32xf32>
    %335 = arith.addf %334, %333 : vector<2x32xf32>
    %336 = arith.divf %334, %335 : vector<2x32xf32>
    %c0_154 = arith.constant 0 : index
    %c0_155 = arith.constant 0 : index
    %337 = vector.load %arg10[%c0_154, %c0_155] : memref<2x32xf32, #tpu.memory_space<vmem>>, vector<2x32xf32>
    %338 = arith.mulf %328, %337 : vector<2x32xf32>
    %339 = arith.mulf %322, %330 : vector<2x32xf32>
    %340 = arith.addf %338, %339 : vector<2x32xf32>
    %341 = math.tanh %340 : vector<2x32xf32>
    %342 = arith.mulf %336, %341 : vector<2x32xf32>
    %c0_156 = arith.constant 0 : index
    %c0_157 = arith.constant 0 : index
    %343 = vector.load %arg9[%c0_156, %c0_157] : memref<2x32xf32, #tpu.memory_space<vmem>>, vector<2x32xf32>
    tpu.vector_store %arg9[%c0_156, %c0_157], %342 {strides = array<i32>} : memref<2x32xf32, #tpu.memory_space<vmem>>, vector<2x32xf32>,
    %c0_158 = arith.constant 0 : index
    %c0_159 = arith.constant 0 : index
    %344 = vector.load %arg10[%c0_158, %c0_159] : memref<2x32xf32, #tpu.memory_space<vmem>>, vector<2x32xf32>
    tpu.vector_store %arg10[%c0_158, %c0_159], %340 {strides = array<i32>} : memref<2x32xf32, #tpu.memory_space<vmem>>, vector<2x32xf32>,
    %c0_160 = arith.constant 0 : index
    %345 = arith.index_cast %310 : i32 to index
    %c0_161 = arith.constant 0 : index
    %c0_162 = arith.constant 0 : index
    %346 = vector.load %arg6[%c0_160, %345, %c0_161, %c0_162] : memref<1x8x2x32xf32, #tpu.memory_space<vmem>>, vector<1x1x2x32xf32>
    %347 = vector.shape_cast %346 : vector<1x1x2x32xf32> to vector<2x32xf32>
    %348 = vector.shape_cast %342 : vector<2x32xf32> to vector<1x1x2x32xf32>
    tpu.vector_store %arg6[%c0_160, %345, %c0_161, %c0_162], %348 {strides = array<i32>} : memref<1x8x2x32xf32, #tpu.memory_space<vmem>>, vector<1x1x2x32xf32>,
    %c8_i32 = arith.constant 8 : i32
    %c0_i32_163 = arith.constant 0 : i32
    %349 = arith.cmpi eq, %arg1, %c0_i32_163 : i32
    %350 = arith.extui %349 : i1 to i32
    %c0_i32_164 = arith.constant 0 : i32
    %351 = arith.cmpi ne, %350, %c0_i32_164 : i32
    scf.if %351 {
      %c0_165 = arith.constant 0 : index
      %c0_166 = arith.constant 0 : index
      %352 = vector.load %arg9[%c0_165, %c0_166] : memref<2x32xf32, #tpu.memory_space<vmem>>, vector<2x32xf32>
      %c0_167 = arith.constant 0 : index
      %c0_168 = arith.constant 0 : index
      %c0_169 = arith.constant 0 : index
      %353 = vector.load %arg7[%c0_167, %c0_168, %c0_169] : memref<1x2x32xf32, #tpu.memory_space<vmem>>, vector<1x2x32xf32>
      %354 = vector.shape_cast %353 : vector<1x2x32xf32> to vector<2x32xf32>
      %355 = vector.shape_cast %352 : vector<2x32xf32> to vector<1x2x32xf32>
      tpu.vector_store %arg7[%c0_167, %c0_168, %c0_169], %355 {strides = array<i32>} : memref<1x2x32xf32, #tpu.memory_space<vmem>>, vector<1x2x32xf32>,
      %c0_170 = arith.constant 0 : index
      %c0_171 = arith.constant 0 : index
      %356 = vector.load %arg10[%c0_170, %c0_171] : memref<2x32xf32, #tpu.memory_space<vmem>>, vector<2x32xf32>
      %c0_172 = arith.constant 0 : index
      %c0_173 = arith.constant 0 : index
      %c0_174 = arith.constant 0 : index
      %357 = vector.load %arg8[%c0_172, %c0_173, %c0_174] : memref<1x2x32xf32, #tpu.memory_space<vmem>>, vector<1x2x32xf32>
      %358 = vector.shape_cast %357 : vector<1x2x32xf32> to vector<2x32xf32>
      %359 = vector.shape_cast %356 : vector<2x32xf32> to vector<1x2x32xf32>
      tpu.vector_store %arg8[%c0_172, %c0_173, %c0_174], %359 {strides = array<i32>} : memref<1x2x32xf32, #tpu.memory_space<vmem>>, vector<1x2x32xf32>,
    } else {
    }
    return
  }
  func.func @transform_0(%arg0: i32, %arg1: i32) -> (i32, i32, i32, i32) {
    %c0_i32 = arith.constant 0 : i32
    %0 = arith.subi %c0_i32, %arg1 : i32
    %1 = arith.muli %arg0, %0 : i32
    %c1_i32 = arith.constant 1 : i32
    %2 = arith.subi %c1_i32, %arg0 : i32
    %3 = arith.muli %2, %arg1 : i32
    %4 = arith.addi %1, %3 : i32
    %c0_i32_0 = arith.constant 0 : i32
    %c0_i32_1 = arith.constant 0 : i32
    %c0_i32_2 = arith.constant 0 : i32
    return %arg0, %4, %c0_i32_0, %c0_i32_1 : i32, i32, i32, i32
  }
  func.func @transform_1(%arg0: i32, %arg1: i32) -> (i32, i32, i32) {
    %c0_i32 = arith.constant 0 : i32
    %c0_i32_0 = arith.constant 0 : i32
    %c0_i32_1 = arith.constant 0 : i32
    return %arg0, %c0_i32, %c0_i32_0 : i32, i32, i32
  }
  func.func @transform_2(%arg0: i32, %arg1: i32) -> (i32, i32, i32) {
    %c0_i32 = arith.constant 0 : i32
    %c0_i32_0 = arith.constant 0 : i32
    %c0_i32_1 = arith.constant 0 : i32
    return %arg0, %c0_i32, %c0_i32_0 : i32, i32, i32
  }
  func.func @transform_3(%arg0: i32, %arg1: i32) -> (i32, i32, i32) {
    %c0_i32 = arith.constant 0 : i32
    %c0_i32_0 = arith.constant 0 : i32
    %c0_i32_1 = arith.constant 0 : i32
    return %arg0, %c0_i32, %c0_i32_0 : i32, i32, i32
  }
  func.func @transform_4(%arg0: i32, %arg1: i32) -> (i32, i32, i32, i32) {
    %c0_i32 = arith.constant 0 : i32
    %0 = arith.subi %c0_i32, %arg1 : i32
    %1 = arith.muli %arg0, %0 : i32
    %c1_i32 = arith.constant 1 : i32
    %2 = arith.subi %c1_i32, %arg0 : i32
    %3 = arith.muli %2, %arg1 : i32
    %4 = arith.addi %1, %3 : i32
    %c0_i32_0 = arith.constant 0 : i32
    %c0_i32_1 = arith.constant 0 : i32
    %c0_i32_2 = arith.constant 0 : i32
    return %arg0, %4, %c0_i32_0, %c0_i32_1 : i32, i32, i32, i32
  }
  func.func @transform_5(%arg0: i32, %arg1: i32) -> (i32, i32, i32) {
    %c0_i32 = arith.constant 0 : i32
    %c0_i32_0 = arith.constant 0 : i32
    %c0_i32_1 = arith.constant 0 : i32
    return %arg0, %c0_i32, %c0_i32_0 : i32, i32, i32
  }
  func.func @transform_6(%arg0: i32, %arg1: i32) -> (i32, i32, i32) {
    %c0_i32 = arith.constant 0 : i32
    %c0_i32_0 = arith.constant 0 : i32
    %c0_i32_1 = arith.constant 0 : i32
    return %arg0, %c0_i32, %c0_i32_0 : i32, i32, i32
  }
}

</mosaic_0001>

<bundles_post_ra>
// kernel: tpu_custom_call.1
= control target key start
LH: loop header
LB: loop body
LE: loop exit
PB: predicated region body
PF: predicated region fallthrough
CT: control target
= control target key end

     0   :  { %s2452_s0 = inlined_call_operand.hbm [shape: f32[2,8,2,128], index: 0, kind: input, shape index: {}]   ;;  %s2453_s1 = inlined_call_operand.hbm [shape: f32[2,32,128], index: 1, kind: input, shape index: {}]   ;;  %s2454_s2 = inlined_call_operand.hbm [shape: f32[2,2,32], index: 2, kind: input, shape index: {}]   ;;  %s2455_s3 = inlined_call_operand.hbm [shape: f32[2,2,32], index: 3, kind: input, shape index: {}]   ;;  %s2456_s4 = inlined_call_operand.hbm [shape: f32[2,8,2,32], index: 4, kind: output, shape index: {0}]   ;;  %s2457_s5 = inlined_call_operand.hbm [shape: f32[2,2,32], index: 5, kind: output, shape index: {1}]   ;;  %s2458_s6 = inlined_call_operand.hbm [shape: f32[2,2,32], index: 6, kind: output, shape index: {2}]  }
   0x1   :  { %2466 = sst [smem:[#allocation27_spill]] %s2452_s0 }
   0x2   :  { %2467 = sst [smem:[#allocation28_spill]] %s2453_s1 }
   0x3   :  { %12 = vsyncpa [#allocation5], 0 }
   0x4   :  { %14 = vsyncpa [#allocation5 + $0x1], 0 }
   0x5   :  { %15 = vsyncpa [#allocation8], 0 }
   0x6   :  { %17 = vsyncpa [#allocation8 + $0x1], 0 }
   0x7   :  { %18 = vsyncpa [#allocation11], 0 }
   0x8   :  { %20 = vsyncpa [#allocation11 + $0x1], 0 }
   0x9   :  { %21 = vsyncpa [#allocation6], 0 }
   0xa   :  { %23 = vsyncpa [#allocation6 + $0x1], 0 }
   0xb   :  { %24 = vsyncpa [#allocation14], 0 }
   0xc   :  { %26 = vsyncpa [#allocation14 + $0x1], 0  ;;  %s2038_s21 = smov 0   ;;  %s2040_s22 = smov 0  }
   0xd   :  { %s2042_s23 = smov 0   ;;  %s2044_s24 = smov 0  }
   0xe   :  { %s2046_s25 = smov 0   ;;  %s2048_s26 = smov 0  }
   0xf LB: > { %2468 = sst [smem:[#allocation21_spill]] %s1973_s21  ;;  %s2069_s27 = sadd.s32 4294967295, %s1993_s26   ;;  %s1993_s26 = sphi %s2048_s26, %s32_s26   ;;  %s1989_s25 = sphi %s2046_s25, %s2492_s25   ;;  %s1985_s24 = sphi %s2044_s24, %s2491_s24   ;;  %s1981_s23 = sphi %s2042_s23, %s2487_s23   ;;  %s1977_s22 = sphi %s2040_s22, %s2490_s22   ;;  %s1973_s21 = sphi %s2038_s21, %s2489_s21  }
  0x10   : > { %2469 = sst [smem:[#allocation22_spill]] %s1981_s23  ;;  %s2459_s28 = sadd.s32 4294967294, %s1993_s26  }
  0x11   : > { %2470 = sst [smem:[#allocation23_spill]] %s1993_s26  ;;  %s44_s29 = sadd.s32 1, %s1989_s25 }
  0x12   : > { %s63_s30 = sadd.s32 1, %s1981_s23  ;;  %p46_p0 = scmp.ge.s32.totalorder %s44_s29, 2 }
  0x13   : > { %p70_p1 = scmp.ne.s32.totalorder %s1981_s23, %s1977_s22  ;;  %p71_p2 = scmp.eq.s32.totalorder %s1993_s26, 0 }
  0x14   : > { %p76_p3 = scmp.ne.s32.totalorder %s1977_s22, %s1973_s21  ;;  %s2494_s29 = smov (%p46_p0, %s44_s29), 0 }
  0x15   : > { %2471 = sst [smem:[#allocation24_spill]] %s2494_s29  ;;  %p2081_p4 = por %p71_p2, %p70_p1 }
  0x16   : > { %p77_p5 = scmp.eq.s32.totalorder %s2069_s27, 0  ;;  %s58_s8 = ssub.s32 %s1989_s25, %s2494_s29 }
  0x17   : > { %p190_p6 = scmp.eq.s32.totalorder %s2069_s27, 1  ;;  %p61_p7 = scmp.eq.s32.totalorder %s58_s8, 0 }
  0x18   : > { %p2089_p8 = por %p77_p5, %p76_p3  ;;  %p196_p10 = scmp.eq.s32.totalorder %s2459_s28, 1 }
  0x19   : > { %p2093_p9 = por %p190_p6, %p70_p1  ;;  %p1505_p12 = scmp.ge.s32.totalorder %s1993_s26, 2 }
  0x1a   : > { %s2100_s11 = scalar_select %p61_p7, %s1981_s23, %s63_s30  }
  0x1b   : > { %p2102_p11 = por %p196_p10, %p76_p3  ;;  %p1601_p13 = scmp.lt.s32.totalorder %s1993_s26, 2 }
  0x1c   : > { %2475 = sst [smem:[#allocation25_spill]] %s2100_s11  ;;  %s2109_s13 = sand.u32 1, %s1981_s23  }
  0x1d   : > { %s2476_s12 = scalar_select %p2102_p11, 1, 0 }
  0x1e   : > { %s297_s14 = sand.u32 1, %s1993_s26   ;;  %s1509_s15 = sshll.u32 %s2109_s13, 5 }
  0x1f   : > { %2477 = sst [smem:[#allocation26_spill]] %s2476_s12  ;;  %p2115_p0 = pnand %p1601_p13, %p2081_p4 }
  0x20   : > { %s1562_s17 = sshll.u32 %s1989_s25, 5  ;;  %s2479_s1 = sld [smem:[#allocation28_spill]] }
  0x21   : > { %s301_s8 = scalar_lea.vmem [#allocation7], %s1509_s15  ;;  %s298_s29 = scalar_lea.sflag [#allocation8], %s297_s14 }
  0x22   : > { %s309_s28 = sshll.u32 %s301_s8, 4  ;;  %s1995_s7 = smov 128   ;;  %s310_s28 = int_to_ptr.vmem [resolvable:$true] %s309_s28 }
  0x23   : > { %s1996_s11 = smov 8   ;;  %p1516_p1 = scmp.ge.s32.totalorder %s1993_s26, 1 }
  0x24   : > { %p355_p2 = scmp.lt.s32.totalorder %s1993_s26, 3  ;;  %s1561_s15 = sshll.u32 %s1989_s25, 4 }
  0x25   : > { %s2481_s0 = sld [smem:[#allocation27_spill]]  ;;  %s1513_s26 = sshll.u32 %s1989_s25, 1 }
  0x26   : > { %s306_s20 = scalar_lea.hbm %s2479_s1, %s1562_s17  ;;  %p2127_p3 = pnand %p1516_p1, %p355_p2 }
  0x27   : > { %s307_s30 = sshll.u32 %s306_s20, 4  ;;  %s1506_s17 = sshll.u32 %s2109_s13, 4  ;;  %s308_s30 = int_to_ptr.hbm [resolvable:$true] %s307_s30 }
  0x28   : > { %1584 = dma.hbm_to_vmem [thread:$0]  (!%p2115_p0), %s308_s30, 512, %s310_s28, %s298_s29, %s1995_s7, %s1995_s7, %s1996_s11  }
  0x29   : > { %s272_s8 = scalar_lea.vmem [#allocation4], %s1506_s17  ;;  %s269_s28 = scalar_lea.sflag [#allocation5], %s2109_s13 }
  0x2a   : > { %s287_s1 = sshll.u32 %s272_s8, 4  ;;  %s1997_s11 = smov 32   ;;  %s288_s1 = int_to_ptr.vmem [resolvable:$true] %s287_s1 }
  0x2b   : > { %s284_s20 = scalar_lea.hbm %s2481_s0, %s1561_s15  ;;  %s1998_s30 = smov 2  }
  0x2c   : > { %s285_s14 = sshll.u32 %s284_s20, 4  ;;  %s1512_s7 = sshll.u32 %s2109_s13, 1  ;;  %s286_s14 = int_to_ptr.hbm [resolvable:$true] %s285_s14 }
  0x2d   : > { %1581 = dma.hbm_to_vmem [thread:$0]  (!%p2115_p0), %s286_s14, 256, %s288_s1, %s269_s28, %s1997_s11, %s1997_s11, %s1998_s30  }
  0x2e   : > { %s327_s18 = scalar_lea.hbm %s2454_s2, %s1513_s26  ;;  %s323_s19 = scalar_lea.vmem [#allocation9], %s1512_s7 }
  0x2f   : > { %s329_s15 = sshll.u32 %s327_s18, 4  ;;  %s331_s17 = sshll.u32 %s323_s19, 4  ;;  %s330_s15 = int_to_ptr.hbm [resolvable:$true] %s329_s15  ;;  %s332_s17 = int_to_ptr.vmem [resolvable:$true] %s331_s17 }
  0x30   : > { %1587 = dma.hbm_to_vmem [thread:$0]  (!%p2115_p0), %s330_s15, 32, %s332_s17, %s298_s29  }
  0x31   : > { %s346_s0 = scalar_lea.hbm %s2455_s3, %s1513_s26  ;;  %s342_s1 = scalar_lea.vmem [#allocation10], %s1512_s7 }
  0x32   : > { %s350_s14 = sshll.u32 %s342_s1, 4  ;;  %s348_s28 = sshll.u32 %s346_s0, 4  ;;  %s351_s14 = int_to_ptr.vmem [resolvable:$true] %s350_s14  ;;  %s349_s28 = int_to_ptr.hbm [resolvable:$true] %s348_s28 }
  0x33   : > { %s339_s11 = scalar_lea.sflag [#allocation11], %s2109_s13  ;;  %359 = sbr.rel (%p2127_p3) target bundleno = 4856 (0x12f8), region = 36 }
  0x34   : > { %1590 = dma.hbm_to_vmem [thread:$0]  (!%p2115_p0), %s349_s28, 32, %s351_s14, %s339_s11  }
  0x35   : > { %s2155_s21 = sand.u32 (!%p2127_p3), 1, %s1977_s22  }
  0x36   : > { %s1517_s29 = sshll.u32 (!%p2127_p3), %s2155_s21, 4  ;;  %s362_s26 = scalar_lea.sflag (!%p2127_p3), [#allocation5], %s2155_s21 }
  0x37   : > { %s2161_s12 = scalar_lea.vmem (!%p2127_p3), [#allocation4], %s1517_s29 }
  0x38   : > { %1952 = dma.done.wait (%p2089_p8), %s362_s26, 256  }
  0x39   : > { %1954 = vsyncadd (%p2089_p8), %s362_s26, 4294967040  ;;  %s371_s0 = sand.u32 1, %s2069_s27   ;;  %s1518_s23 = sshll.u32 %s2155_s21, 5 }
  0x3a   : > { %s372_s13 = scalar_lea.sflag [#allocation8], %s371_s0  ;;  %s375_s16 = scalar_lea.vmem [#allocation7], %s1518_s23 }
  0x3b   : > { %1956 = dma.done.wait (%p2089_p8), %s372_s13, 544  }
  0x3c   : > { %1958 = vsyncadd (%p2089_p8), %s372_s13, 4294966752  ;;  %s2176_s30 = sshll.u32 %s2155_s21, 1  ;;  %s392_s18 = scalar_lea.sflag [#allocation11], %s2155_s21 }
  0x3d   : > { %s385_s7 = scalar_lea.vmem [#allocation9], %s2176_s30  ;;  %s395_s15 = scalar_lea.vmem [#allocation10], %s2176_s30 }
  0x3e   : > { %1960 = dma.done.wait (%p2089_p8), %s392_s18, 32  }
  0x3f   : > { %1962 = vsyncadd (%p2089_p8), %s392_s18, 4294967264  ;;  %vm467_vm0 = vcmask 254976   ;;  %v474_v0 = vld [vmem:[%s375_s16 + $0x18] sm:$0xff]  ;;  %v473_v1 = vld [vmem:[%s375_s16 + $0x10] sm:$0xff]  ;;  %vm480_vm1 = vcmask 261120   ;;  %s1524_s9 = smul.u32 14, %s1985_s24 }
  0x40   : > { %496 = vmatpush.msra.mxu0 %v474_v0  ;;  %v466_v2 = vld [vmem:[%s385_s7] sm:$0x3]  ;;  %582 = vmatpush.msra.mxu1 %v474_v0  ;;  %v472_v3 = vld [vmem:[%s375_s16 + $0x8] sm:$0xff]  ;;  %v469_v6 = vld [vmem:[%s395_s15] sm:$0x3]  ;;  %s1999_s17 = smov 64  }
  0x41   : > { %468 = vst.msk [vmem:[#allocation2] sm:$0x3] %vm467_vm0, %v466_v2  ;;  %667 = vmatpush.msra.mxu2 %v474_v0  ;;  %752 = vmatpush.msra.mxu3 %v474_v0  ;;  %v471_v4 = vld [vmem:[%s375_s16] sm:$0xff]  ;;  %s477_s19 = scalar_lea.vmem %s2161_s12, %s1524_s9 [#allocation4]  ;;  %s2000_s20 = smov 32  }
  0x42   : > { %497 = vmatpush.msra.mxu0 %v473_v1  ;;  %583 = vmatpush.msra.mxu1 %v473_v1  ;;  %470 = vst.msk [vmem:[#allocation3] sm:$0x3] %vm467_vm0, %v469_v6  ;;  %v478_v7 = vld [vmem:[%s477_s19] sm:$0x3]  ;;  %s2001_s8 = smov 96   ;;  %s2202_s1 = scalar_lea.vmem [#allocation12], %s1517_s29 }
  0x43   : > { %668 = vmatpush.msra.mxu2 %v473_v1  ;;  %753 = vmatpush.msra.mxu3 %v473_v1  ;;  %s558_s14 = scalar_lea.vmem %s2202_s1, %s1524_s9 [#allocation12]  ;;  %s560_s28 = smul.u32 6, %s1985_s24 }
  0x44   : > { %498 = vmatpush.msra.mxu0 %v472_v3  ;;  %584 = vmatpush.msra.mxu1 %v472_v3  ;;  %s2214_s11 = ssub.s32 1, %s1985_s24  ;;  %s645_s16 = smul.u32 5, %s1985_s24 }
  0x45   : > { %669 = vmatpush.msra.mxu2 %v472_v3  ;;  %754 = vmatpush.msra.mxu3 %v472_v3  ;;  %s2217_s29 = sadd.s32 %s2214_s11, %s560_s28  ;;  %s1530_s7 = sshll.u32 %s2214_s11, 1 }
  0x46   : > { %499 = vmatpush.msra.mxu0 %v471_v4  ;;  %585 = vmatpush.msra.mxu1 %v471_v4  ;;  %s1527_s26 = sshll.u32 %s2217_s29, 1  ;;  %s2238_s18 = sadd.s32 %s1530_s7, %s645_s16 }
  0x47   : > { %670 = vmatpush.msra.mxu2 %v471_v4  ;;  %755 = vmatpush.msra.mxu3 %v471_v4  ;;  %s564_s23 = scalar_lea.vmem %s2161_s12, %s1527_s26 [#allocation4]  ;;  %s643_s13 = scalar_lea.vmem %s2202_s1, %s1527_s26 [#allocation12] }
  0x48   : > { %v479_v5 = vld [vmem:[#allocation2] sm:$0x3]  ;;  %837 = vmatpush.msrb.mxu0 %v474_v0  ;;  %922 = vmatpush.msrb.mxu1 %v474_v0  ;;  %s1531_s15 = sshll.u32 %s2238_s18, 1  ;;  %s1534_s28 = sshll.u32 %s1985_s24, 2 }
  0x49   : > { %1525 = vmatmul.msk.f32.vlgmr.msra.gmra.mxu0 %vm480_vm1, %v479_v5  ;;  %1006 = vmatpush.msrb.mxu2 %v474_v0  ;;  %v525_v11 = vld [vmem:[#allocation3] sm:$0x3]  ;;  %v565_v38 = vld [vmem:[%s564_s23] sm:$0x3]  ;;  %s649_s9 = scalar_lea.vmem %s2161_s12, %s1531_s15 [#allocation4]  ;;  %s728_s19 = scalar_lea.vmem %s2202_s1, %s1531_s15 [#allocation12] }
  0x4a   : > { %838 = vmatpush.msrb.mxu0 %v473_v1  ;;  %923 = vmatpush.msrb.mxu1 %v473_v1  ;;  %s815_s16 = smul.u32 3, %s1985_s24  ;;  %s1538_s7 = sshll.u32 %s2214_s11, 2 }
  0x4b   : > { %1007 = vmatpush.msrb.mxu2 %v473_v1  ;;  %1089 = vmatpush.msrb.mxu3 %v474_v0 }
  0x4c   : > { %839 = vmatpush.msrb.mxu0 %v472_v3  ;;  %924 = vmatpush.msrb.mxu1 %v472_v3  ;;  %s2280_s18 = sadd.s32 %s1538_s7, %s815_s16  ;;  %s985_s16 = smul.u32 6, %s2214_s11 }
  0x4d   : > { %1008 = vmatpush.msrb.mxu2 %v472_v3  ;;  %1090 = vmatpush.msrb.mxu3 %v473_v1  ;;  %s1539_s15 = sshll.u32 %s2280_s18, 1 }
  0x4e   : > { %840 = vmatpush.msrb.mxu0 %v471_v4  ;;  %925 = vmatpush.msrb.mxu1 %v471_v4  ;;  %s2325_s7 = sadd.s32 %s1985_s24, %s985_s16 }
  0x4f   : > { %1009 = vmatpush.msrb.mxu2 %v471_v4  ;;  %1091 = vmatpush.msrb.mxu3 %v472_v3  ;;  %s1546_s18 = sshll.u32 %s2325_s7, 1 }
  0x51   : > { %1092 = vmatpush.msrb.mxu3 %v471_v4  ;;  %v650_v4 = vld [vmem:[%s649_s9] sm:$0x3]  ;;  %s819_s9 = scalar_lea.vmem %s2161_s12, %s1539_s15 [#allocation4] }
  0xc6   : > { %v501_v8 = vpop.f32.mrf.mxu0 }
  0xc7   : > { %v504_v9 = vadd.f32 %v501_v8, %v478_v7 }
  0xc9   : > { %1659 = vtanh.f32 %v504_v9  ;;  %v1526_v12 = vmul.f32 -1.442695, %v504_v9 }
  0xcb   : > { %1661 = vpow2.f32 %v1526_v12 }
  0xcf   : > { %v1660_v10 = vpop.eup %1659 }
  0xd0   : > { %532 = vrot.lane.b32.xlu0 %v1660_v10, %s1999_s17 }
  0xd1   : > { %v1662_v13 = vpop.eup %1661 }
  0xd2   : > { %v508_v14 = vadd.f32 1.0, %v1662_v13 }
  0xd4   : > { %1663 = vrcp.f32 %v508_v14  ;;  %v520_v20 = vand.u32 2147483648, %v508_v14  ;;  %vm514_vm3 = vweird.f32 %v508_v14  ;;  %v518_v21 = vand.u32 2147483647, %v508_v14 }
  0xd6   : > { %v521_v23 = vor.u32 1.1754944e-38, %v520_v20  ;;  %vm519_vm5 = vcmp.eq.f32.partialorder %v518_v21, 8.507059e+37 }
  0xd8   : > { %527 = vrot.lane.b32.xlu0 %v525_v11, %s2000_s20 }
  0xda   : > { %v1664_v15 = vpop.eup %1663 }
  0xdb   : > { %v510_v16 = vmul.f32 %v1664_v15, %v508_v14  ;;  %vm515_vm2 = vweird.f32 %v1664_v15 }
  0xdc   : > { %vm516_vm4 = vmor %vm514_vm3, %vm515_vm2 }
  0xdd   : > { %v511_v17 = vsub.f32 1.0, %v510_v16 }
  0xdf   : > { %v512_v18 = vmul.f32 %v1664_v15, %v511_v17 }
  0xe1   : > { %v513_v19 = vadd.f32 %v1664_v15, %v512_v18 }
  0xe3   : > { %v517_v22 = vsel %vm516_vm4, %v1664_v15, %v513_v19 }
  0xe4   : > { %v522_v25 = vsel %vm519_vm5, %v521_v23, %v517_v22 }
 0x142   : > { %v533_v24 = vpop.permute.xlu0 %532 }
 0x143   : > { %v535_v26 = vmul.f32 %v533_v24, %v522_v25 }
 0x145   : > { %537 = vrot.lane.b32.xlu1 %v535_v26, %s2000_s20 }
 0x14a   : > { %v528_v27 = vpop.permute.xlu0 %527 }
 0x14b   : > { %v530_v28 = vmul.f32 %v528_v27, %v522_v25 }
 0x1b7   : > { %v538_v29 = vpop.permute.xlu1 %537 }
 0x1b8   : > { %v540_v30 = vadd.f32 %v538_v29, %v530_v28 }
 0x1ba   : > { %1665 = vtanh.f32 %v540_v30 }
 0x1c0   : > { %v1666_v31 = vpop.eup %1665 }
 0x1c1   : > { %543 = vrot.lane.b32.xlu1 %v1666_v31, %s1999_s17 }
 0x233   : > { %v544_v32 = vpop.permute.xlu1 %543 }
 0x234   : > { %v546_v33 = vmul.f32 %v544_v32, %v522_v25 }
 0x236   : > { %548 = vrot.lane.b32.xlu2 %v546_v33, %s2000_s20 }
 0x23e   : > { %554 = vrot.lane.b32.xlu2 %v540_v30, %s2001_s8 }
 0x290   : > { %v549_v34 = vpop.permute.xlu2 %548 }
 0x291   : > { %552 = vst.msk [vmem:[#allocation2] sm:$0x3] %vm467_vm0, %v549_v34 }
 0x292   : > { %559 = vst.msk [vmem:[%s558_s14] sm:$0x3] %vm467_vm0, %v549_v34  ;;  %s731_s14 = smul.u32 3, %s2214_s11 }
 0x294   : > { %s2259_s29 = sadd.s32 %s1534_s28, %s731_s14  ;;  %s901_s14 = smul.u32 5, %s2214_s11 }
 0x295   : > { %s1535_s26 = sshll.u32 %s2259_s29, 1  ;;  %s2301_s28 = sshll.u32 %s1985_s24, 1 }
 0x296   : > { %s734_s23 = scalar_lea.vmem %s2161_s12, %s1535_s26 [#allocation4]  ;;  %s2304_s29 = sadd.s32 %s2301_s28, %s901_s14 }
 0x297   : > { %v735_v34 = vld [vmem:[%s734_s23] sm:$0x3] }
 0x298   : > { %v555_v35 = vpop.permute.xlu2 %554  ;;  %v566_v36 = vld [vmem:[#allocation2] sm:$0x3] }
 0x299   : > { %557 = vst.msk [vmem:[#allocation3] sm:$0x3] %vm467_vm0, %v555_v35  ;;  %1528 = vmatmul.msk.f32.vlgmr.msra.gmra.mxu1 %vm480_vm1, %v566_v36 }
 0x2a0   : > { %v611_v37 = vld [vmem:[#allocation3] sm:$0x3] }
 0x2a1   : > { %613 = vrot.lane.b32.xlu1 %v611_v37, %s2000_s20 }
 0x313   : > { %v614_v57 = vpop.permute.xlu1 %613 }
 0x316   : > { %v587_v39 = vpop.f32.mrf.mxu1 }
 0x317   : > { %v590_v40 = vadd.f32 %v587_v39, %v565_v38 }
 0x319   : > { %1667 = vtanh.f32 %v590_v40  ;;  %v1529_v42 = vmul.f32 -1.442695, %v590_v40 }
 0x31b   : > { %1669 = vpow2.f32 %v1529_v42 }
 0x31f   : > { %v1668_v41 = vpop.eup %1667 }
 0x320   : > { %618 = vrot.lane.b32.xlu0 %v1668_v41, %s1999_s17 }
 0x321   : > { %v1670_v43 = vpop.eup %1669 }
 0x322   : > { %v594_v44 = vadd.f32 1.0, %v1670_v43 }
 0x324   : > { %1671 = vrcp.f32 %v594_v44  ;;  %v606_v50 = vand.u32 2147483648, %v594_v44  ;;  %vm600_vm7 = vweird.f32 %v594_v44  ;;  %v604_v51 = vand.u32 2147483647, %v594_v44 }
 0x326   : > { %v607_v53 = vor.u32 1.1754944e-38, %v606_v50  ;;  %vm605_vm9 = vcmp.eq.f32.partialorder %v604_v51, 8.507059e+37 }
 0x32a   : > { %v1672_v45 = vpop.eup %1671 }
 0x32b   : > { %v596_v46 = vmul.f32 %v1672_v45, %v594_v44  ;;  %vm601_vm6 = vweird.f32 %v1672_v45 }
 0x32c   : > { %vm602_vm8 = vmor %vm600_vm7, %vm601_vm6 }
 0x32d   : > { %v597_v47 = vsub.f32 1.0, %v596_v46 }
 0x32f   : > { %v598_v48 = vmul.f32 %v1672_v45, %v597_v47 }
 0x331   : > { %v599_v49 = vadd.f32 %v1672_v45, %v598_v48 }
 0x333   : > { %v603_v52 = vsel %vm602_vm8, %v1672_v45, %v599_v49 }
 0x334   : > { %v608_v55 = vsel %vm605_vm9, %v607_v53, %v603_v52 }
 0x335   : > { %v616_v58 = vmul.f32 %v614_v57, %v608_v55 }
 0x392   : > { %v619_v54 = vpop.permute.xlu0 %618 }
 0x393   : > { %v621_v56 = vmul.f32 %v619_v54, %v608_v55 }
 0x395   : > { %623 = vrot.lane.b32.xlu2 %v621_v56, %s2000_s20 }
 0x3ef   : > { %v624_v59 = vpop.permute.xlu2 %623 }
 0x3f0   : > { %v626_v60 = vadd.f32 %v624_v59, %v616_v58 }
 0x3f2   : > { %1673 = vtanh.f32 %v626_v60  ;;  %639 = vrot.lane.b32.xlu2 %v626_v60, %s2001_s8 }
 0x3f8   : > { %v1674_v61 = vpop.eup %1673 }
 0x3f9   : > { %629 = vrot.lane.b32.xlu0 %v1674_v61, %s1999_s17 }
 0x44c   : > { %v640_v62 = vpop.permute.xlu2 %639 }
 0x44d   : > { %642 = vst.msk [vmem:[#allocation3] sm:$0x3] %vm467_vm0, %v640_v62 }
 0x454   : > { %v696_v1 = vld [vmem:[#allocation3] sm:$0x3] }
 0x46b   : > { %v630_v63 = vpop.permute.xlu0 %629 }
 0x46c   : > { %v632_v0 = vmul.f32 %v630_v63, %v608_v55 }
 0x46e   : > { %634 = vrot.lane.b32.xlu1 %v632_v0, %s2000_s20  ;;  %v820_v0 = vld [vmem:[%s819_s9] sm:$0x3]  ;;  %s1067_s9 = scalar_lea.vmem %s2202_s1, %s1546_s18 [#allocation12] }
 0x476   : > { %698 = vrot.lane.b32.xlu1 %v696_v1, %s2000_s20 }
 0x4e0   : > { %v635_v2 = vpop.permute.xlu1 %634 }
 0x4e1   : > { %637 = vst.msk [vmem:[#allocation2] sm:$0x3] %vm467_vm0, %v635_v2 }
 0x4e2   : > { %644 = vst.msk [vmem:[%s643_s13] sm:$0x3] %vm467_vm0, %v635_v2  ;;  %s813_s13 = scalar_lea.vmem %s2202_s1, %s1535_s26 [#allocation12]  ;;  %s1543_s26 = sshll.u32 %s2304_s29, 1 }
 0x4e3   : > { %s904_s23 = scalar_lea.vmem %s2161_s12, %s1543_s26 [#allocation4] }
 0x4e8   : > { %v651_v3 = vld [vmem:[#allocation2] sm:$0x3]  ;;  %v699_v23 = vpop.permute.xlu1 %698 }
 0x4e9   : > { %1532 = vmatmul.msk.f32.vlgmr.msra.gmra.mxu2 %vm480_vm1, %v651_v3 }
 0x56c   : > { %v672_v5 = vpop.f32.mrf.mxu2 }
 0x56d   : > { %v675_v6 = vadd.f32 %v672_v5, %v650_v4 }
 0x56f   : > { %1675 = vtanh.f32 %v675_v6  ;;  %v1533_v8 = vmul.f32 -1.442695, %v675_v6 }
 0x571   : > { %1677 = vpow2.f32 %v1533_v8 }
 0x575   : > { %v1676_v7 = vpop.eup %1675 }
 0x576   : > { %703 = vrot.lane.b32.xlu0 %v1676_v7, %s1999_s17 }
 0x577   : > { %v1678_v9 = vpop.eup %1677 }
 0x578   : > { %v679_v10 = vadd.f32 1.0, %v1678_v9 }
 0x57a   : > { %1679 = vrcp.f32 %v679_v10  ;;  %v691_v16 = vand.u32 2147483648, %v679_v10  ;;  %vm685_vm11 = vweird.f32 %v679_v10  ;;  %v689_v17 = vand.u32 2147483647, %v679_v10 }
 0x57c   : > { %v692_v19 = vor.u32 1.1754944e-38, %v691_v16  ;;  %vm690_vm13 = vcmp.eq.f32.partialorder %v689_v17, 8.507059e+37 }
 0x580   : > { %v1680_v11 = vpop.eup %1679 }
 0x581   : > { %v681_v12 = vmul.f32 %v1680_v11, %v679_v10  ;;  %vm686_vm10 = vweird.f32 %v1680_v11 }
 0x582   : > { %vm687_vm12 = vmor %vm685_vm11, %vm686_vm10 }
 0x583   : > { %v682_v13 = vsub.f32 1.0, %v681_v12 }
 0x585   : > { %v683_v14 = vmul.f32 %v1680_v11, %v682_v13 }
 0x587   : > { %v684_v15 = vadd.f32 %v1680_v11, %v683_v14 }
 0x589   : > { %v688_v18 = vsel %vm687_vm12, %v1680_v11, %v684_v15 }
 0x58a   : > { %v693_v21 = vsel %vm690_vm13, %v692_v19, %v688_v18 }
 0x58b   : > { %v701_v24 = vmul.f32 %v699_v23, %v693_v21 }
 0x5e8   : > { %v704_v20 = vpop.permute.xlu0 %703 }
 0x5e9   : > { %v706_v22 = vmul.f32 %v704_v20, %v693_v21 }
 0x5eb   : > { %708 = vrot.lane.b32.xlu2 %v706_v22, %s2000_s20 }
 0x645   : > { %v709_v25 = vpop.permute.xlu2 %708 }
 0x646   : > { %v711_v26 = vadd.f32 %v709_v25, %v701_v24 }
 0x648   : > { %1681 = vtanh.f32 %v711_v26  ;;  %724 = vrot.lane.b32.xlu2 %v711_v26, %s2001_s8 }
 0x64e   : > { %v1682_v27 = vpop.eup %1681 }
 0x64f   : > { %714 = vrot.lane.b32.xlu0 %v1682_v27, %s1999_s17 }
 0x6a2   : > { %v725_v28 = vpop.permute.xlu2 %724 }
 0x6a3   : > { %727 = vst.msk [vmem:[#allocation3] sm:$0x3] %vm467_vm0, %v725_v28 }
 0x6aa   : > { %v781_v31 = vld [vmem:[#allocation3] sm:$0x3] }
 0x6c1   : > { %v715_v29 = vpop.permute.xlu0 %714 }
 0x6c2   : > { %v717_v30 = vmul.f32 %v715_v29, %v693_v21 }
 0x6c4   : > { %719 = vrot.lane.b32.xlu1 %v717_v30, %s2000_s20  ;;  %v905_v30 = vld [vmem:[%s904_s23] sm:$0x3]  ;;  %s1189_s23 = sshll.u32 %s2202_s1, 4  ;;  %s1190_s23 = int_to_ptr.vmem [resolvable:$true] %s1189_s23 }
 0x6cc   : > { %783 = vrot.lane.b32.xlu1 %v781_v31, %s2000_s20 }
 0x736   : > { %v720_v32 = vpop.permute.xlu1 %719 }
 0x737   : > { %722 = vst.msk [vmem:[#allocation2] sm:$0x3] %vm467_vm0, %v720_v32 }
 0x738   : > { %729 = vst.msk [vmem:[%s728_s19] sm:$0x3] %vm467_vm0, %v720_v32  ;;  %s898_s19 = scalar_lea.vmem %s2202_s1, %s1539_s15 [#allocation12]  ;;  %s988_s15 = scalar_lea.vmem %s2161_s12, %s1546_s18 [#allocation4] }
 0x73e   : > { %v736_v33 = vld [vmem:[#allocation2] sm:$0x3]  ;;  %v784_v53 = vpop.permute.xlu1 %783 }
 0x73f   : > { %1536 = vmatmul.msk.f32.vlgmr.msra.gmra.mxu3 %vm480_vm1, %v736_v33 }
 0x7c2   : > { %v757_v35 = vpop.f32.mrf.mxu3 }
 0x7c3   : > { %v760_v36 = vadd.f32 %v757_v35, %v735_v34 }
 0x7c5   : > { %1683 = vtanh.f32 %v760_v36  ;;  %v1537_v38 = vmul.f32 -1.442695, %v760_v36 }
 0x7c7   : > { %1685 = vpow2.f32 %v1537_v38 }
 0x7cb   : > { %v1684_v37 = vpop.eup %1683 }
 0x7cc   : > { %788 = vrot.lane.b32.xlu0 %v1684_v37, %s1999_s17 }
 0x7cd   : > { %v1686_v39 = vpop.eup %1685 }
 0x7ce   : > { %v764_v40 = vadd.f32 1.0, %v1686_v39 }
 0x7d0   : > { %1687 = vrcp.f32 %v764_v40  ;;  %v776_v46 = vand.u32 2147483648, %v764_v40  ;;  %vm770_vm15 = vweird.f32 %v764_v40  ;;  %v774_v47 = vand.u32 2147483647, %v764_v40 }
 0x7d2   : > { %v777_v49 = vor.u32 1.1754944e-38, %v776_v46  ;;  %vm775_vm3 = vcmp.eq.f32.partialorder %v774_v47, 8.507059e+37 }
 0x7d6   : > { %v1688_v41 = vpop.eup %1687 }
 0x7d7   : > { %v766_v42 = vmul.f32 %v1688_v41, %v764_v40  ;;  %vm771_vm14 = vweird.f32 %v1688_v41 }
 0x7d8   : > { %vm772_vm2 = vmor %vm770_vm15, %vm771_vm14 }
 0x7d9   : > { %v767_v43 = vsub.f32 1.0, %v766_v42 }
 0x7db   : > { %v768_v44 = vmul.f32 %v1688_v41, %v767_v43 }
 0x7dd   : > { %v769_v45 = vadd.f32 %v1688_v41, %v768_v44 }
 0x7df   : > { %v773_v48 = vsel %vm772_vm2, %v1688_v41, %v769_v45 }
 0x7e0   : > { %v778_v51 = vsel %vm775_vm3, %v777_v49, %v773_v48 }
 0x7e1   : > { %v786_v54 = vmul.f32 %v784_v53, %v778_v51 }
 0x83e   : > { %v789_v50 = vpop.permute.xlu0 %788 }
 0x83f   : > { %v791_v52 = vmul.f32 %v789_v50, %v778_v51 }
 0x841   : > { %793 = vrot.lane.b32.xlu2 %v791_v52, %s2000_s20 }
 0x89b   : > { %v794_v55 = vpop.permute.xlu2 %793 }
 0x89c   : > { %v796_v56 = vadd.f32 %v794_v55, %v786_v54 }
 0x89e   : > { %1689 = vtanh.f32 %v796_v56  ;;  %809 = vrot.lane.b32.xlu2 %v796_v56, %s2001_s8 }
 0x8a4   : > { %v1690_v57 = vpop.eup %1689 }
 0x8a5   : > { %799 = vrot.lane.b32.xlu0 %v1690_v57, %s1999_s17 }
 0x8f8   : > { %v810_v58 = vpop.permute.xlu2 %809 }
 0x8f9   : > { %812 = vst.msk [vmem:[#allocation3] sm:$0x3] %vm467_vm0, %v810_v58 }
 0x900   : > { %v866_v61 = vld [vmem:[#allocation3] sm:$0x3] }
 0x917   : > { %v800_v59 = vpop.permute.xlu0 %799 }
 0x918   : > { %v802_v60 = vmul.f32 %v800_v59, %v778_v51 }
 0x91a   : > { %804 = vrot.lane.b32.xlu1 %v802_v60, %s2000_s20  ;;  %v989_v60 = vld [vmem:[%s988_s15] sm:$0x3]  ;;  %s1204_s15 = scalar_lea.hbm %s2457_s5, %s2301_s28 }
 0x922   : > { %868 = vrot.lane.b32.xlu1 %v866_v61, %s2000_s20 }
 0x98c   : > { %v805_v62 = vpop.permute.xlu1 %804 }
 0x98d   : > { %807 = vst.msk [vmem:[#allocation2] sm:$0x3] %vm467_vm0, %v805_v62 }
 0x98e   : > { %814 = vst.msk [vmem:[%s813_s13] sm:$0x3] %vm467_vm0, %v805_v62  ;;  %s983_s13 = scalar_lea.vmem %s2202_s1, %s1543_s26 [#allocation12] }
 0x994   : > { %v821_v63 = vld [vmem:[#allocation2] sm:$0x3]  ;;  %v869_v19 = vpop.permute.xlu1 %868 }
 0x995   : > { %1540 = vmatmul.msk.f32.vlgmr.msrb.gmra.mxu0 %vm480_vm1, %v821_v63 }
 0xa12   : > { %v842_v1 = vpop.f32.mrf.mxu0 }
 0xa13   : > { %v845_v2 = vadd.f32 %v842_v1, %v820_v0 }
 0xa15   : > { %1691 = vtanh.f32 %v845_v2  ;;  %v1541_v4 = vmul.f32 -1.442695, %v845_v2 }
 0xa17   : > { %1693 = vpow2.f32 %v1541_v4 }
 0xa1b   : > { %v1692_v3 = vpop.eup %1691 }
 0xa1c   : > { %873 = vrot.lane.b32.xlu0 %v1692_v3, %s1999_s17 }
 0xa1d   : > { %v1694_v5 = vpop.eup %1693 }
 0xa1e   : > { %v849_v6 = vadd.f32 1.0, %v1694_v5 }
 0xa20   : > { %1695 = vrcp.f32 %v849_v6  ;;  %v861_v12 = vand.u32 2147483648, %v849_v6  ;;  %vm855_vm5 = vweird.f32 %v849_v6  ;;  %v859_v13 = vand.u32 2147483647, %v849_v6 }
 0xa22   : > { %v862_v15 = vor.u32 1.1754944e-38, %v861_v12  ;;  %vm860_vm7 = vcmp.eq.f32.partialorder %v859_v13, 8.507059e+37 }
 0xa26   : > { %v1696_v7 = vpop.eup %1695 }
 0xa27   : > { %v851_v8 = vmul.f32 %v1696_v7, %v849_v6  ;;  %vm856_vm4 = vweird.f32 %v1696_v7 }
 0xa28   : > { %vm857_vm6 = vmor %vm855_vm5, %vm856_vm4 }
 0xa29   : > { %v852_v9 = vsub.f32 1.0, %v851_v8 }
 0xa2b   : > { %v853_v10 = vmul.f32 %v1696_v7, %v852_v9 }
 0xa2d   : > { %v854_v11 = vadd.f32 %v1696_v7, %v853_v10 }
 0xa2f   : > { %v858_v14 = vsel %vm857_vm6, %v1696_v7, %v854_v11 }
 0xa30   : > { %v863_v17 = vsel %vm860_vm7, %v862_v15, %v858_v14 }
 0xa31   : > { %v871_v20 = vmul.f32 %v869_v19, %v863_v17 }
 0xa8e   : > { %v874_v16 = vpop.permute.xlu0 %873 }
 0xa8f   : > { %v876_v18 = vmul.f32 %v874_v16, %v863_v17 }
 0xa91   : > { %878 = vrot.lane.b32.xlu2 %v876_v18, %s2000_s20 }
 0xaeb   : > { %v879_v21 = vpop.permute.xlu2 %878 }
 0xaec   : > { %v881_v22 = vadd.f32 %v879_v21, %v871_v20 }
 0xaee   : > { %1697 = vtanh.f32 %v881_v22  ;;  %894 = vrot.lane.b32.xlu2 %v881_v22, %s2001_s8 }
 0xaf4   : > { %v1698_v23 = vpop.eup %1697 }
 0xaf5   : > { %884 = vrot.lane.b32.xlu0 %v1698_v23, %s1999_s17 }
 0xb48   : > { %v895_v24 = vpop.permute.xlu2 %894 }
 0xb49   : > { %897 = vst.msk [vmem:[#allocation3] sm:$0x3] %vm467_vm0, %v895_v24 }
 0xb50   : > { %v951_v27 = vld [vmem:[#allocation3] sm:$0x3] }
 0xb67   : > { %v885_v25 = vpop.permute.xlu0 %884 }
 0xb68   : > { %v887_v26 = vmul.f32 %v885_v25, %v863_v17 }
 0xb6a   : > { %889 = vrot.lane.b32.xlu1 %v887_v26, %s2000_s20 }
 0xb72   : > { %953 = vrot.lane.b32.xlu1 %v951_v27, %s2000_s20 }
 0xbdc   : > { %v890_v28 = vpop.permute.xlu1 %889 }
 0xbdd   : > { %892 = vst.msk [vmem:[#allocation2] sm:$0x3] %vm467_vm0, %v890_v28 }
 0xbde   : > { %899 = vst.msk [vmem:[%s898_s19] sm:$0x3] %vm467_vm0, %v890_v28  ;;  %s1549_s19 = smul.u32 14, %s2214_s11 }
 0xbe0   : > { %s1071_s14 = scalar_lea.vmem %s2161_s12, %s1549_s19 [#allocation4]  ;;  %s449_s12 = scalar_lea.vmem [#allocation15], %s2176_s30 }
 0xbe1   : > { %v1072_v26 = vld [vmem:[%s1071_s14] sm:$0x3]  ;;  %s1150_s16 = scalar_lea.vmem %s2202_s1, %s1549_s19 [#allocation12]  ;;  %s1218_s14 = scalar_lea.hbm %s2458_s6, %s2301_s28 }
 0xbe2   : > { %s1863_s19 = scalar_lea.hbm %s2456_s4, 32 }
 0xbe4   : > { %v906_v29 = vld [vmem:[#allocation2] sm:$0x3]  ;;  %v954_v49 = vpop.permute.xlu1 %953 }
 0xbe5   : > { %1544 = vmatmul.msk.f32.vlgmr.msrb.gmra.mxu1 %vm480_vm1, %v906_v29 }
 0xc62   : > { %v927_v31 = vpop.f32.mrf.mxu1 }
 0xc63   : > { %v930_v32 = vadd.f32 %v927_v31, %v905_v30 }
 0xc65   : > { %1699 = vtanh.f32 %v930_v32  ;;  %v1545_v34 = vmul.f32 -1.442695, %v930_v32 }
 0xc67   : > { %1701 = vpow2.f32 %v1545_v34 }
 0xc6b   : > { %v1700_v33 = vpop.eup %1699 }
 0xc6c   : > { %958 = vrot.lane.b32.xlu0 %v1700_v33, %s1999_s17 }
 0xc6d   : > { %v1702_v35 = vpop.eup %1701 }
 0xc6e   : > { %v934_v36 = vadd.f32 1.0, %v1702_v35 }
 0xc70   : > { %1703 = vrcp.f32 %v934_v36  ;;  %v946_v42 = vand.u32 2147483648, %v934_v36  ;;  %vm940_vm9 = vweird.f32 %v934_v36  ;;  %v944_v43 = vand.u32 2147483647, %v934_v36 }
 0xc72   : > { %v947_v45 = vor.u32 1.1754944e-38, %v946_v42  ;;  %vm945_vm11 = vcmp.eq.f32.partialorder %v944_v43, 8.507059e+37 }
 0xc76   : > { %v1704_v37 = vpop.eup %1703 }
 0xc77   : > { %v936_v38 = vmul.f32 %v1704_v37, %v934_v36  ;;  %vm941_vm8 = vweird.f32 %v1704_v37 }
 0xc78   : > { %vm942_vm10 = vmor %vm940_vm9, %vm941_vm8 }
 0xc79   : > { %v937_v39 = vsub.f32 1.0, %v936_v38 }
 0xc7b   : > { %v938_v40 = vmul.f32 %v1704_v37, %v937_v39 }
 0xc7d   : > { %v939_v41 = vadd.f32 %v1704_v37, %v938_v40 }
 0xc7f   : > { %v943_v44 = vsel %vm942_vm10, %v1704_v37, %v939_v41 }
 0xc80   : > { %v948_v47 = vsel %vm945_vm11, %v947_v45, %v943_v44 }
 0xc81   : > { %v956_v50 = vmul.f32 %v954_v49, %v948_v47 }
 0xcde   : > { %v959_v46 = vpop.permute.xlu0 %958 }
 0xcdf   : > { %v961_v48 = vmul.f32 %v959_v46, %v948_v47 }
 0xce1   : > { %963 = vrot.lane.b32.xlu2 %v961_v48, %s2000_s20 }
 0xd3b   : > { %v964_v51 = vpop.permute.xlu2 %963 }
 0xd3c   : > { %v966_v52 = vadd.f32 %v964_v51, %v956_v50 }
 0xd3e   : > { %1705 = vtanh.f32 %v966_v52  ;;  %979 = vrot.lane.b32.xlu2 %v966_v52, %s2001_s8 }
 0xd44   : > { %v1706_v53 = vpop.eup %1705 }
 0xd45   : > { %969 = vrot.lane.b32.xlu0 %v1706_v53, %s1999_s17 }
 0xd98   : > { %v980_v54 = vpop.permute.xlu2 %979 }
 0xd99   : > { %982 = vst.msk [vmem:[#allocation3] sm:$0x3] %vm467_vm0, %v980_v54 }
 0xda0   : > { %v1035_v57 = vld [vmem:[#allocation3] sm:$0x3] }
 0xdb7   : > { %v970_v55 = vpop.permute.xlu0 %969 }
 0xdb8   : > { %v972_v56 = vmul.f32 %v970_v55, %v948_v47 }
 0xdba   : > { %974 = vrot.lane.b32.xlu1 %v972_v56, %s2000_s20 }
 0xdc2   : > { %1037 = vrot.lane.b32.xlu1 %v1035_v57, %s2000_s20 }
 0xe2c   : > { %v975_v58 = vpop.permute.xlu1 %974 }
 0xe2d   : > { %977 = vst.msk [vmem:[#allocation2] sm:$0x3] %vm467_vm0, %v975_v58 }
 0xe2e   : > { %984 = vst.msk [vmem:[%s983_s13] sm:$0x3] %vm467_vm0, %v975_v58 }
 0xe34   : > { %v990_v59 = vld [vmem:[#allocation2] sm:$0x3]  ;;  %v1038_v15 = vpop.permute.xlu1 %1037 }
 0xe35   : > { %1547 = vmatmul.msk.f32.vlgmr.msrb.gmra.mxu2 %vm480_vm1, %v990_v59 }
 0xeb8   : > { %v1011_v61 = vpop.f32.mrf.mxu2 }
 0xeb9   : > { %v1014_v62 = vadd.f32 %v1011_v61, %v989_v60 }
 0xebb   : > { %1707 = vtanh.f32 %v1014_v62  ;;  %v1548_v0 = vmul.f32 -1.442695, %v1014_v62 }
 0xebd   : > { %1709 = vpow2.f32 %v1548_v0 }
 0xec1   : > { %v1708_v63 = vpop.eup %1707 }
 0xec2   : > { %1042 = vrot.lane.b32.xlu0 %v1708_v63, %s1999_s17 }
 0xec3   : > { %v1710_v1 = vpop.eup %1709 }
 0xec4   : > { %v1018_v2 = vadd.f32 1.0, %v1710_v1 }
 0xec6   : > { %1711 = vrcp.f32 %v1018_v2  ;;  %v1030_v8 = vand.u32 2147483648, %v1018_v2  ;;  %vm1024_vm13 = vweird.f32 %v1018_v2  ;;  %v1028_v9 = vand.u32 2147483647, %v1018_v2 }
 0xec8   : > { %v1031_v11 = vor.u32 1.1754944e-38, %v1030_v8  ;;  %vm1029_vm15 = vcmp.eq.f32.partialorder %v1028_v9, 8.507059e+37 }
 0xecc   : > { %v1712_v3 = vpop.eup %1711 }
 0xecd   : > { %v1020_v4 = vmul.f32 %v1712_v3, %v1018_v2  ;;  %vm1025_vm12 = vweird.f32 %v1712_v3 }
 0xece   : > { %vm1026_vm14 = vmor %vm1024_vm13, %vm1025_vm12 }
 0xecf   : > { %v1021_v5 = vsub.f32 1.0, %v1020_v4 }
 0xed1   : > { %v1022_v6 = vmul.f32 %v1712_v3, %v1021_v5 }
 0xed3   : > { %v1023_v7 = vadd.f32 %v1712_v3, %v1022_v6 }
 0xed5   : > { %v1027_v10 = vsel %vm1026_vm14, %v1712_v3, %v1023_v7 }
 0xed6   : > { %v1032_v13 = vsel %vm1029_vm15, %v1031_v11, %v1027_v10 }
 0xed7   : > { %v1040_v16 = vmul.f32 %v1038_v15, %v1032_v13 }
 0xf34   : > { %v1043_v12 = vpop.permute.xlu0 %1042 }
 0xf35   : > { %v1045_v14 = vmul.f32 %v1043_v12, %v1032_v13 }
 0xf37   : > { %1047 = vrot.lane.b32.xlu2 %v1045_v14, %s2000_s20 }
 0xf91   : > { %v1048_v17 = vpop.permute.xlu2 %1047 }
 0xf92   : > { %v1050_v18 = vadd.f32 %v1048_v17, %v1040_v16 }
 0xf94   : > { %1713 = vtanh.f32 %v1050_v18  ;;  %1063 = vrot.lane.b32.xlu2 %v1050_v18, %s2001_s8 }
 0xf9a   : > { %v1714_v19 = vpop.eup %1713 }
 0xf9b   : > { %1053 = vrot.lane.b32.xlu0 %v1714_v19, %s1999_s17 }
 0xfee   : > { %v1064_v20 = vpop.permute.xlu2 %1063 }
 0xfef   : > { %1066 = vst.msk [vmem:[#allocation3] sm:$0x3] %vm467_vm0, %v1064_v20 }
 0xff6   : > { %v1118_v23 = vld [vmem:[#allocation3] sm:$0x3] }
0x100d   : > { %v1054_v21 = vpop.permute.xlu0 %1053 }
0x100e   : > { %v1056_v22 = vmul.f32 %v1054_v21, %v1032_v13 }
0x1010   : > { %1058 = vrot.lane.b32.xlu1 %v1056_v22, %s2000_s20 }
0x1018   : > { %1120 = vrot.lane.b32.xlu1 %v1118_v23, %s2000_s20 }
0x1082   : > { %v1059_v24 = vpop.permute.xlu1 %1058 }
0x1083   : > { %1061 = vst.msk [vmem:[#allocation2] sm:$0x3] %vm467_vm0, %v1059_v24 }
0x1084   : > { %1068 = vst.msk [vmem:[%s1067_s9] sm:$0x3] %vm467_vm0, %v1059_v24 }
0x108a   : > { %v1073_v25 = vld [vmem:[#allocation2] sm:$0x3]  ;;  %v1121_v45 = vpop.permute.xlu1 %1120 }
0x108b   : > { %1550 = vmatmul.msk.f32.vlgmr.msrb.gmra.mxu3 %vm480_vm1, %v1073_v25 }
0x110e   : > { %v1094_v27 = vpop.f32.mrf.mxu3 }
0x110f   : > { %v1097_v28 = vadd.f32 %v1094_v27, %v1072_v26 }
0x1111   : > { %1715 = vtanh.f32 %v1097_v28  ;;  %v1551_v30 = vmul.f32 -1.442695, %v1097_v28 }
0x1113   : > { %1717 = vpow2.f32 %v1551_v30 }
0x1117   : > { %v1716_v29 = vpop.eup %1715 }
0x1118   : > { %1125 = vrot.lane.b32.xlu0 %v1716_v29, %s1999_s17 }
0x1119   : > { %v1718_v31 = vpop.eup %1717 }
0x111a   : > { %v1101_v32 = vadd.f32 1.0, %v1718_v31 }
0x111c   : > { %1719 = vrcp.f32 %v1101_v32  ;;  %v1113_v38 = vand.u32 2147483648, %v1101_v32  ;;  %vm1107_vm2 = vweird.f32 %v1101_v32  ;;  %v1111_v39 = vand.u32 2147483647, %v1101_v32 }
0x111e   : > { %v1114_v41 = vor.u32 1.1754944e-38, %v1113_v38  ;;  %vm1112_vm4 = vcmp.eq.f32.partialorder %v1111_v39, 8.507059e+37 }
0x1122   : > { %v1720_v33 = vpop.eup %1719 }
0x1123   : > { %v1103_v34 = vmul.f32 %v1720_v33, %v1101_v32  ;;  %vm1108_vm1 = vweird.f32 %v1720_v33 }
0x1124   : > { %vm1109_vm3 = vmor %vm1107_vm2, %vm1108_vm1 }
0x1125   : > { %v1104_v35 = vsub.f32 1.0, %v1103_v34 }
0x1127   : > { %v1105_v36 = vmul.f32 %v1720_v33, %v1104_v35 }
0x1129   : > { %v1106_v37 = vadd.f32 %v1720_v33, %v1105_v36 }
0x112b   : > { %v1110_v40 = vsel %vm1109_vm3, %v1720_v33, %v1106_v37 }
0x112c   : > { %v1115_v43 = vsel %vm1112_vm4, %v1114_v41, %v1110_v40 }
0x112d   : > { %v1123_v46 = vmul.f32 %v1121_v45, %v1115_v43 }
0x118a   : > { %v1126_v42 = vpop.permute.xlu0 %1125 }
0x118b   : > { %v1128_v44 = vmul.f32 %v1126_v42, %v1115_v43 }
0x118d   : > { %1130 = vrot.lane.b32.xlu2 %v1128_v44, %s2000_s20 }
0x11e7   : > { %v1131_v47 = vpop.permute.xlu2 %1130 }
0x11e8   : > { %v1133_v48 = vadd.f32 %v1131_v47, %v1123_v46 }
0x11ea   : > { %1721 = vtanh.f32 %v1133_v48  ;;  %1146 = vrot.lane.b32.xlu2 %v1133_v48, %s2001_s8  ;;  %s1563_s8 = sshll.u32 %s1985_s24, 4 }
0x11f0   : > { %v1722_v49 = vpop.eup %1721 }
0x11f1   : > { %1136 = vrot.lane.b32.xlu0 %v1722_v49, %s1999_s17  ;;  %s1188_s17 = scalar_lea.hbm %s2456_s4, %s1563_s8  ;;  %s1160_s8 = scalar_lea.sflag [#allocation6], %s2155_s21 }
0x11f2   : > { %s1191_s13 = sshll.u32 %s1188_s17, 4  ;;  %s1192_s13 = int_to_ptr.hbm [resolvable:$true] %s1191_s13 }
0x11f3   : > { %s1857_s29 = sshra.s32 %s1192_s13, 4  ;;  %s1858_s29 = int_to_ptr.hbm [resolvable:$true] %s1857_s29 }
0x11f4   : > { %s1859_s26 = scalar_lea.hbm %s1858_s29, 16  ;;  %p1864_p7 = scmp.lt.s32.totalorder %s1858_s29, %s2456_s4 }
0x11f5   : > { %p1860_p4 = scmp.ne.s32.totalorder %s1858_s29, %s1859_s26  ;;  %p1865_p8 = scmp.lt.s32.totalorder %s1863_s19, %s1859_s26 }
0x11f7   : > { %p1861_p5 = pnand %p1860_p4, %p2093_p9  ;;  %p1866_p10 = por %p1865_p8, %p1864_p7 }
0x11f9   : > { %p1862_p6 = pneg %p1861_p5 }
0x11fb   : > { %p1867_p13 = pnand %p1866_p10, %p1862_p6 }
0x1244   : > { %v1147_v50 = vpop.permute.xlu2 %1146 }
0x1245   : > { %1149 = vst.msk [vmem:[#allocation3] sm:$0x3] %vm467_vm0, %v1147_v50 }
0x124c   : > { %v1157_v51 = vld [vmem:[#allocation3] sm:$0x3] }
0x124d   : > { %1158 = vst.msk [vmem:[%s449_s12] sm:$0x3] %vm467_vm0, %v1157_v51 }
0x1263   : > { %v1137_v52 = vpop.permute.xlu0 %1136 }
0x1264   : > { %v1139_v53 = vmul.f32 %v1137_v52, %v1115_v43 }
0x1266   : > { %1141 = vrot.lane.b32.xlu1 %v1139_v53, %s2000_s20 }
0x12d8   : > { %v1142_v54 = vpop.permute.xlu1 %1141 }
0x12d9   : > { %1144 = vst.msk [vmem:[#allocation2] sm:$0x3] %vm467_vm0, %v1142_v54 }
0x12da   : > { %1151 = vst.msk [vmem:[%s1150_s16] sm:$0x3] %vm467_vm0, %v1142_v54 }
0x12db   : > { %1870 = shalt.err (!%p1867_p13)
}
0x12dc   : > { %s2002_s21 = smov 2   ;;  %s442_s28 = scalar_lea.vmem [#allocation13], %s2176_s30 }
0x12dd   : > { %1572 = dma.vmem_to_hbm [thread:$0]  (%p2093_p9), %s1190_s23, 256, %s1192_s13, %s1160_s8, %s2000_s20, %s2000_s20, %s2002_s21  }
0x12de   : > { %s1206_s16 = sshll.u32 %s442_s28, 4  ;;  %s1208_s18 = sshll.u32 %s1204_s15, 4  ;;  %s1207_s16 = int_to_ptr.vmem [resolvable:$true] %s1206_s16  ;;  %s1209_s18 = int_to_ptr.hbm [resolvable:$true] %s1208_s18 }
0x12df   : > { %s2390_s9 = sshll.u32 %s1218_s14, 4  ;;  %s2394_s24 = sshll.u32 %s449_s12, 4  ;;  %s1221_s24 = int_to_ptr.vmem [resolvable:$true] %s2394_s24  ;;  %s1223_s9 = int_to_ptr.hbm [resolvable:$true] %s2390_s9 }
0x12e0   : > { %v1155_v55 = vld [vmem:[#allocation2] sm:$0x3]  ;;  %s1165_s20 = scalar_lea.sflag [#allocation14], %s371_s0  ;;  %s1885_s23 = sshra.s32 %s1209_s18, 4  ;;  %s1886_s23 = int_to_ptr.hbm [resolvable:$true] %s1885_s23 }
0x12e1   : > { %1156 = vst.msk [vmem:[%s442_s28] sm:$0x3] %vm467_vm0, %v1155_v55  ;;  %s1887_s13 = scalar_lea.hbm %s1886_s23, 2  ;;  %s1891_s15 = scalar_lea.hbm %s2457_s5, 4 }
0x12e2   : > { %p1888_p0 = scmp.ne.s32.totalorder %s1886_s23, %s1887_s13  ;;  %p1892_p3 = scmp.lt.s32.totalorder %s1886_s23, %s2457_s5 }
0x12e3   : > { %p1893_p4 = scmp.lt.s32.totalorder %s1891_s15, %s1887_s13 }
0x12e4   : > { %p1889_p1 = pnand %p1888_p0, %p2093_p9 }
0x12e5   : > { %p1894_p5 = por %p1893_p4, %p1892_p3 }
0x12e6   : > { %p1890_p2 = pneg %p1889_p1 }
0x12e8   : > { %p1895_p6 = pnand %p1894_p5, %p1890_p2 }
0x12ea   : > { %1898 = shalt.err (!%p1895_p6)
}
0x12eb   : > { %1573 = dma.vmem_to_hbm [thread:$0]  (%p2093_p9), %s1207_s16, 32, %s1209_s18, %s1165_s20  }
0x12ec   : > { %s1913_s27 = sshra.s32 %s1223_s9, 4  ;;  %s1919_s1 = scalar_lea.hbm %s2458_s6, 4  ;;  %s1914_s27 = int_to_ptr.hbm [resolvable:$true] %s1913_s27 }
0x12ed   : > { %s1915_s0 = scalar_lea.hbm %s1914_s27, 2  ;;  %p1920_p13 = scmp.lt.s32.totalorder %s1914_s27, %s2458_s6 }
0x12ee   : > { %p1916_p7 = scmp.ne.s32.totalorder %s1914_s27, %s1915_s0  ;;  %p1921_p0 = scmp.lt.s32.totalorder %s1919_s1, %s1915_s0 }
0x12f0   : > { %p1917_p8 = pnand %p1916_p7, %p2093_p9  ;;  %p1922_p1 = por %p1921_p0, %p1920_p13 }
0x12f2   : > { %p1918_p10 = pneg %p1917_p8 }
0x12f4   : > { %p1923_p2 = pnand %p1922_p1, %p1918_p10 }
0x12f6   : > { %1926 = shalt.err (!%p1923_p2)
}
0x12f7   : > { %1574 = dma.vmem_to_hbm [thread:$0]  (%p2093_p9), %s1221_s24, 32, %s1223_s9, %s1165_s20  }
0x12f8 PF: > { %s2482_s17 = sld [smem:[#allocation21_spill]]  ;;  %p1592_p3 = pnand %p1505_p12, %p2102_p11 }
0x12f9   : > { %s2484_s21 = sld [smem:[#allocation23_spill]] }
0x12fa   : > { %p1593_p4 = pneg %p1592_p3 }
0x12fe   : > { %s1234_s28 = sand.u32 1, %s2482_s17  }
0x12ff   : > { %s1235_s16 = scalar_lea.sflag [#allocation6], %s1234_s28 }
0x1300   : > { %1964 = dma.done.wait (%p1593_p4), %s1235_s16, 256  }
0x1301   : > { %1966 = vsyncadd (%p1593_p4), %s1235_s16, 4294967040  ;;  %s2485_s18 = sadd.s32 4294967294, %s2484_s21  }
0x1302   : > { %s1244_s10 = sand.u32 1, %s2485_s18  }
0x1303   : > { %s1245_s23 = scalar_lea.sflag [#allocation14], %s1244_s10 }
0x1304   : > { %1968 = dma.done.wait (%p1593_p4), %s1245_s23, 64  }
0x1305   : > { %1970 = vsyncadd (%p1593_p4), %s1245_s23, 4294967232  ;;  %s32_s26 = sadd.s32 1, %s2484_s21   ;;  %s2486_s9 = sld [smem:[#allocation22_spill]] }
0x1306   : > { %p29_p9 = scmp.ge.s32.totalorder %s32_s26, 4   ;;  %s2487_s23 = sld [smem:[#allocation25_spill]] }
0x1307   : > { %s2488_s20 = sld [smem:[#allocation24_spill]]  ;;  %s2489_s21 = smov %s1977_s22 }
0x1308   : > { %s2491_s24 = smov %s1989_s25 }
0x1309   :  { %31 = sbr.rel (!%p29_p9) target bundleno = 15 (0xf), region = 174 }
0x130b   : > { %s2490_s22 = smov %s2486_s9 }
0x130d   : > { %s2492_s25 = smov %s2488_s20 }
0x130e   :  { %1261 = vsyncpa [#allocation5], 1 }
0x130f   :  { %1263 = vsyncpa [#allocation5 + $0x1], 1 }
0x1310   :  { %1264 = vsyncpa [#allocation8], 1 }
0x1311   :  { %1266 = vsyncpa [#allocation8 + $0x1], 1 }
0x1312   :  { %1267 = vsyncpa [#allocation11], 1 }
0x1313   :  { %1269 = vsyncpa [#allocation11 + $0x1], 1 }
0x1314   :  { %1270 = vsyncpa [#allocation6], 1 }
0x1315   :  { %1272 = vsyncpa [#allocation6 + $0x1], 1 }
0x1316   :  { %1273 = vsyncpa [#allocation14], 1 }
0x1317   :  { %1275 = vsyncpa [#allocation14 + $0x1], 1 }

</bundles_post_ra>
